<compile_context>
chip_gen: v6e
topology: v6e:2x2x1
jax: 0.10.0
libtpu: 0.0.40
codegen_flags: <defaults>
</compile_context>

<pallas_src>
import jax
import jax.numpy as jnp
from jax import lax
import numpy as np
from jax.experimental import pallas as pl
from jax.experimental.pallas import tpu as pltpu

# ---- Model configuration (consistent with PredicterRNN.forward) -------------
INPUT_DIM = 16                      # forced by input.view(-1, 25, 16)
HIDDEN_DIM = 32
OUTPUT_SIZE = 10
NUM_LAYERS = 2
SEQ_LEN = 4
LSTM_BATCH = 25                     # the "25" in view(-1, 25, 16)
PAD_BATCH = 32                      # 25 padded up to whole 8-row sublane groups
BATCH_SIZE = SEQ_LEN * LSTM_BATCH   # 100; required so lstm_out.view(batch_size, -1)
                                    # has exactly hidden_dim columns for dense1
NROWS = SEQ_LEN * PAD_BATCH         # 128 padded rows processed inside the kernel


# ---- Fused Pallas kernel: LSTM x2 + dense head --------------------------------
def fused_kernel(x_ref, wih0_ref, whh0_ref, b0_ref, wih1_ref, whh1_ref, b1_ref,
                 w1_ref, bd1_ref, w2_ref, bd2_ref, o_ref, gx_scr, y_scr):
    # x_ref:   (T*Bp, I)          padded, time-major-flattened input
    # wihL:    (I_L, 4H)  whhL: (H, 4H)  bL: (1, 4H)     (L = 0, 1)
    # w1: (H, H/2) bd1: (1, H/2)  w2: (H/2, O) bd2: (1, O)
    # o_ref:   (T*Bp, O)          padded log-probs (padding stripped by wrapper)
    # gx_scr:  (T*Bp, 4H) f32     hoisted input-projection (reused per layer)
    # y_scr:   (T*Bp, H)  f32     per-layer hidden-state sequence (reused)
    Bp = PAD_BATCH
    H = HIDDEN_DIM
    T = x_ref.shape[0] // Bp

    def run_layer(x_in, wih, whh, b):
        # Hoisted input projection: one tall matmul + single bias add.
        gx_scr[...] = jnp.dot(x_in, wih, preferred_element_type=jnp.float32) + b
        h = jnp.zeros((Bp, H), jnp.float32)
        c = jnp.zeros((Bp, H), jnp.float32)
        for t in range(T):  # fully unrolled; T=4 is static
            g = (gx_scr[pl.ds(t * Bp, Bp), :]
                 + jnp.dot(h, whh, preferred_element_type=jnp.float32))   # (Bp, 4H)
            sig = jax.nn.sigmoid(g)       # full 128-lane EUP pass
            th = jnp.tanh(g)              # full 128-lane EUP pass
            c = sig[:, H:2 * H] * c + sig[:, 0:H] * th[:, 2 * H:3 * H]
            h = sig[:, 3 * H:4 * H] * jnp.tanh(c)
            y_scr[pl.ds(t * Bp, Bp), :] = h

    run_layer(x_ref[...], wih0_ref[...], whh0_ref[...], b0_ref[...])
    run_layer(y_scr[...], wih1_ref[...], whh1_ref[...], b1_ref[...])
    y1 = y_scr[...]                                                    # (T*Bp, H)

    # Dense head (applied to padded rows too; per-row ops, stripped by wrapper).
    h1 = jnp.tanh(jnp.dot(y1, w1_ref[...], preferred_element_type=jnp.float32)
                  + bd1_ref[...])
    logits = jnp.tanh(jnp.dot(h1, w2_ref[...], preferred_element_type=jnp.float32)
                      + bd2_ref[...])
    m = jnp.max(logits, axis=1, keepdims=True)
    shifted = logits - m
    lse = jnp.log(jnp.sum(jnp.exp(shifted), axis=1, keepdims=True))
    o_ref[...] = (shifted - lse).astype(o_ref.dtype)


def fused_forward(x2d, wih0_t, whh0_t, b_l0, wih1_t, whh1_t, b_l1, w1_t, bd1, w2_t, bd2):
    vspec = pl.BlockSpec(memory_space=pltpu.MemorySpace.VMEM)
    return pl.pallas_call(
        fused_kernel,
        out_shape=jax.ShapeDtypeStruct((NROWS, OUTPUT_SIZE), jnp.float32),
        in_specs=[vspec] * 11,
        out_specs=vspec,
        scratch_shapes=[
            pltpu.VMEM((NROWS, 4 * HIDDEN_DIM), jnp.float32),
            pltpu.VMEM((NROWS, HIDDEN_DIM), jnp.float32),
        ],
        compiler_params=pltpu.CompilerParams(vmem_limit_bytes=4 * 1024 * 1024),
    )(x2d, wih0_t, whh0_t, b_l0, wih1_t, whh1_t, b_l1, w1_t, bd1, w2_t, bd2)


# ---- Parameter init (deterministic; PyTorch-style uniform(-1/sqrt(H), 1/sqrt(H))) ----
def init_params(key):
    k = 1.0 / np.sqrt(HIDDEN_DIM)
    params = {"lstm": []}
    for layer in range(NUM_LAYERS):
        in_dim = INPUT_DIM if layer == 0 else HIDDEN_DIM
        key, k1, k2, k3, k4 = jax.random.split(key, 5)
        w_ih = jax.random.uniform(k1, (4 * HIDDEN_DIM, in_dim), jnp.float32, -k, k)
        w_hh = jax.random.uniform(k2, (4 * HIDDEN_DIM, HIDDEN_DIM), jnp.float32, -k, k)
        b_ih = jax.random.uniform(k3, (4 * HIDDEN_DIM,), jnp.float32, -k, k)
        b_hh = jax.random.uniform(k4, (4 * HIDDEN_DIM,), jnp.float32, -k, k)
        params["lstm"].append(
            (w_ih.T, w_hh.T, (b_ih + b_hh).reshape(1, 4 * HIDDEN_DIM)))
    h2 = HIDDEN_DIM // 2
    key, k1, k2, k3, k4 = jax.random.split(key, 5)
    k_d1 = 1.0 / np.sqrt(HIDDEN_DIM)
    k_d2 = 1.0 / np.sqrt(h2)
    params["w1_t"] = jax.random.uniform(k1, (HIDDEN_DIM, h2), jnp.float32, -k_d1, k_d1)
    params["b1"] = jax.random.uniform(k2, (1, h2), jnp.float32, -k_d1, k_d1)
    params["w2_t"] = jax.random.uniform(k3, (h2, OUTPUT_SIZE), jnp.float32, -k_d2, k_d2)
    params["b2"] = jax.random.uniform(k4, (1, OUTPUT_SIZE), jnp.float32, -k_d2, k_d2)
    return params


# ---- Forward pass (pad/strip in plain JAX, all compute in one Pallas kernel) ----
def predicter_rnn_forward(params, x):
    # x: (BATCH_SIZE, INPUT_DIM) -> view(-1, 25, 16) => (T, 25, 16), time-major
    seq = x.reshape(SEQ_LEN, LSTM_BATCH, INPUT_DIM)
    # Pad the LSTM batch 25 -> 32 (whole sublane groups); padded rows are
    # independent per-row lanes and are stripped after the kernel.
    seq_p = jnp.pad(seq, ((0, 0), (0, PAD_BATCH - LSTM_BATCH), (0, 0)))
    x2d = seq_p.reshape(NROWS, INPUT_DIM)                       # (128, 16)
    (wih0_t, whh0_t, b_l0), (wih1_t, whh1_t, b_l1) = params["lstm"]
    out_p = fused_forward(x2d, wih0_t, whh0_t, b_l0, wih1_t, whh1_t, b_l1,
                          params["w1_t"], params["b1"],
                          params["w2_t"], params["b2"])          # (128, 10)
    out = out_p.reshape(SEQ_LEN, PAD_BATCH, OUTPUT_SIZE)[:, :LSTM_BATCH, :]
    return out.reshape(BATCH_SIZE, OUTPUT_SIZE)                  # lstm_out.view order


# ---- Pure-JAX reference for correctness --------------------------------------
def reference_forward(params, x):
    seq = x.reshape(-1, LSTM_BATCH, INPUT_DIM)
    y = seq
    for (wih_t, whh_t, b) in params["lstm"]:
        H = whh_t.shape[0]
        B = y.shape[1]

        def step(carry, x_t):
            h, c = carry
            gates = x_t @ wih_t + h @ whh_t + b[0]
            i_g = jax.nn.sigmoid(gates[:, :H])
            f_g = jax.nn.sigmoid(gates[:, H:2 * H])
            g_g = jnp.tanh(gates[:, 2 * H:3 * H])
            o_g = jax.nn.sigmoid(gates[:, 3 * H:])
            c = f_g * c + i_g * g_g
            h = o_g * jnp.tanh(c)
            return (h, c), h

        init = (jnp.zeros((B, H), jnp.float32), jnp.zeros((B, H), jnp.float32))
        _, y = lax.scan(step, init, y)
    flat = y.reshape(BATCH_SIZE, HIDDEN_DIM)
    h1 = jnp.tanh(flat @ params["w1_t"] + params["b1"])
    logits = jnp.tanh(h1 @ params["w2_t"] + params["b2"])
    return jax.nn.log_softmax(logits, axis=1)


if __name__ == "__main__":
    key = jax.random.PRNGKey(0)
    key, pkey, xkey = jax.random.split(key, 3)
    params = init_params(pkey)
    x = jax.random.normal(xkey, (BATCH_SIZE, INPUT_DIM), jnp.float32)

    fwd = jax.jit(predicter_rnn_forward)
    out = fwd(params, x)
    out = jax.block_until_ready(out)

    ref = reference_forward(params, x)
    np.testing.assert_allclose(np.asarray(out), np.asarray(ref), rtol=1e-4, atol=1e-4)

    assert out.shape == (BATCH_SIZE, OUTPUT_SIZE)
    print("KERNEL_OK")
</pallas_src>

<mosaic_0001>
module attributes {stable_mosaic.version = 11 : i64} {
  func.func @fused_kernel(%arg0: memref<128x16xf32, #tpu.memory_space<vmem>>, %arg1: memref<16x128xf32, #tpu.memory_space<vmem>>, %arg2: memref<32x128xf32, #tpu.memory_space<vmem>>, %arg3: memref<1x128xf32, #tpu.memory_space<vmem>>, %arg4: memref<32x128xf32, #tpu.memory_space<vmem>>, %arg5: memref<32x128xf32, #tpu.memory_space<vmem>>, %arg6: memref<1x128xf32, #tpu.memory_space<vmem>>, %arg7: memref<32x16xf32, #tpu.memory_space<vmem>>, %arg8: memref<1x16xf32, #tpu.memory_space<vmem>>, %arg9: memref<16x10xf32, #tpu.memory_space<vmem>>, %arg10: memref<1x10xf32, #tpu.memory_space<vmem>>, %arg11: memref<128x10xf32, #tpu.memory_space<vmem>>, %arg12: memref<128x128xf32, #tpu.memory_space<vmem>>, %arg13: memref<128x32xf32, #tpu.memory_space<vmem>>) attributes {dimension_semantics = [], scalar_prefetch = 0 : i64, scratch_operands = 2 : i64, tpu.core_type = #tpu.core_type<tc>} {
    %c0 = arith.constant 0 : index
    %c0_0 = arith.constant 0 : index
    %0 = vector.load %arg0[%c0, %c0_0] : memref<128x16xf32, #tpu.memory_space<vmem>>, vector<128x16xf32>
    %c0_1 = arith.constant 0 : index
    %c0_2 = arith.constant 0 : index
    %1 = vector.load %arg1[%c0_1, %c0_2] : memref<16x128xf32, #tpu.memory_space<vmem>>, vector<16x128xf32>
    %c0_3 = arith.constant 0 : index
    %c0_4 = arith.constant 0 : index
    %2 = vector.load %arg2[%c0_3, %c0_4] : memref<32x128xf32, #tpu.memory_space<vmem>>, vector<32x128xf32>
    %c0_5 = arith.constant 0 : index
    %c0_6 = arith.constant 0 : index
    %3 = vector.load %arg3[%c0_5, %c0_6] : memref<1x128xf32, #tpu.memory_space<vmem>>, vector<1x128xf32>
    %cst = arith.constant dense<0.000000e+00> : vector<128x128xf32>
    %4 = tpu.matmul %0, %1, %cst {dimension_numbers = #tpu.dot_dimension_numbers<[1], [0], [0], [1], [0, 0, 1, 1], [], []>} : vector<128x16xf32>, vector<16x128xf32>, vector<128x128xf32> -> vector<128x128xf32>
    %5 = vector.broadcast %3 : vector<1x128xf32> to vector<128x128xf32>
    %6 = arith.addf %4, %5 : vector<128x128xf32>
    %c0_7 = arith.constant 0 : index
    %c0_8 = arith.constant 0 : index
    %7 = vector.load %arg12[%c0_7, %c0_8] : memref<128x128xf32, #tpu.memory_space<vmem>>, vector<128x128xf32>
    tpu.vector_store %arg12[%c0_7, %c0_8], %6 {strides = array<i32>} : memref<128x128xf32, #tpu.memory_space<vmem>>, vector<128x128xf32>,
    %cst_9 = arith.constant 0.000000e+00 : f32
    %8 = vector.broadcast %cst_9 : f32 to vector<32x32xf32>
    %cst_10 = arith.constant 0.000000e+00 : f32
    %9 = vector.broadcast %cst_10 : f32 to vector<32x32xf32>
    %c0_11 = arith.constant 0 : index
    %c0_12 = arith.constant 0 : index
    %10 = vector.load %arg12[%c0_11, %c0_12] : memref<128x128xf32, #tpu.memory_space<vmem>>, vector<32x128xf32>
    %cst_13 = arith.constant dense<0.000000e+00> : vector<32x128xf32>
    %11 = tpu.matmul %8, %2, %cst_13 {dimension_numbers = #tpu.dot_dimension_numbers<[1], [0], [0], [1], [0, 0, 1, 1], [], []>} : vector<32x32xf32>, vector<32x128xf32>, vector<32x128xf32> -> vector<32x128xf32>
    %12 = arith.addf %10, %11 : vector<32x128xf32>
    %13 = arith.negf %12 : vector<32x128xf32>
    %14 = math.exp %13 : vector<32x128xf32>
    %cst_14 = arith.constant 1.000000e+00 : f32
    %15 = vector.broadcast %cst_14 : f32 to vector<32x128xf32>
    %16 = arith.addf %15, %14 : vector<32x128xf32>
    %17 = arith.divf %15, %16 : vector<32x128xf32>
    %18 = math.tanh %12 : vector<32x128xf32>
    %19 = vector.extract_strided_slice %17 {offsets = [0, 32], sizes = [32, 32], strides = [1, 1]} : vector<32x128xf32> to vector<32x32xf32>
    %20 = arith.mulf %19, %9 : vector<32x32xf32>
    %21 = vector.extract_strided_slice %17 {offsets = [0, 0], sizes = [32, 32], strides = [1, 1]} : vector<32x128xf32> to vector<32x32xf32>
    %22 = vector.extract_strided_slice %18 {offsets = [0, 64], sizes = [32, 32], strides = [1, 1]} : vector<32x128xf32> to vector<32x32xf32>
    %23 = arith.mulf %21, %22 : vector<32x32xf32>
    %24 = arith.addf %20, %23 : vector<32x32xf32>
    %25 = vector.extract_strided_slice %17 {offsets = [0, 96], sizes = [32, 32], strides = [1, 1]} : vector<32x128xf32> to vector<32x32xf32>
    %26 = math.tanh %24 : vector<32x32xf32>
    %27 = arith.mulf %25, %26 : vector<32x32xf32>
    %c0_15 = arith.constant 0 : index
    %c0_16 = arith.constant 0 : index
    %28 = vector.load %arg13[%c0_15, %c0_16] : memref<128x32xf32, #tpu.memory_space<vmem>>, vector<32x32xf32>
    tpu.vector_store %arg13[%c0_15, %c0_16], %27 {strides = array<i32>} : memref<128x32xf32, #tpu.memory_space<vmem>>, vector<32x32xf32>,
    %c32 = arith.constant 32 : index
    %c0_17 = arith.constant 0 : index
    %29 = vector.load %arg12[%c32, %c0_17] : memref<128x128xf32, #tpu.memory_space<vmem>>, vector<32x128xf32>
    %cst_18 = arith.constant dense<0.000000e+00> : vector<32x128xf32>
    %30 = tpu.matmul %27, %2, %cst_18 {dimension_numbers = #tpu.dot_dimension_numbers<[1], [0], [0], [1], [0, 0, 1, 1], [], []>} : vector<32x32xf32>, vector<32x128xf32>, vector<32x128xf32> -> vector<32x128xf32>
    %31 = arith.addf %29, %30 : vector<32x128xf32>
    %32 = arith.negf %31 : vector<32x128xf32>
    %33 = math.exp %32 : vector<32x128xf32>
    %cst_19 = arith.constant 1.000000e+00 : f32
    %34 = vector.broadcast %cst_19 : f32 to vector<32x128xf32>
    %35 = arith.addf %34, %33 : vector<32x128xf32>
    %36 = arith.divf %34, %35 : vector<32x128xf32>
    %37 = math.tanh %31 : vector<32x128xf32>
    %38 = vector.extract_strided_slice %36 {offsets = [0, 32], sizes = [32, 32], strides = [1, 1]} : vector<32x128xf32> to vector<32x32xf32>
    %39 = arith.mulf %38, %24 : vector<32x32xf32>
    %40 = vector.extract_strided_slice %36 {offsets = [0, 0], sizes = [32, 32], strides = [1, 1]} : vector<32x128xf32> to vector<32x32xf32>
    %41 = vector.extract_strided_slice %37 {offsets = [0, 64], sizes = [32, 32], strides = [1, 1]} : vector<32x128xf32> to vector<32x32xf32>
    %42 = arith.mulf %40, %41 : vector<32x32xf32>
    %43 = arith.addf %39, %42 : vector<32x32xf32>
    %44 = vector.extract_strided_slice %36 {offsets = [0, 96], sizes = [32, 32], strides = [1, 1]} : vector<32x128xf32> to vector<32x32xf32>
    %45 = math.tanh %43 : vector<32x32xf32>
    %46 = arith.mulf %44, %45 : vector<32x32xf32>
    %c32_20 = arith.constant 32 : index
    %c0_21 = arith.constant 0 : index
    %47 = vector.load %arg13[%c32_20, %c0_21] : memref<128x32xf32, #tpu.memory_space<vmem>>, vector<32x32xf32>
    tpu.vector_store %arg13[%c32_20, %c0_21], %46 {strides = array<i32>} : memref<128x32xf32, #tpu.memory_space<vmem>>, vector<32x32xf32>,
    %c64 = arith.constant 64 : index
    %c0_22 = arith.constant 0 : index
    %48 = vector.load %arg12[%c64, %c0_22] : memref<128x128xf32, #tpu.memory_space<vmem>>, vector<32x128xf32>
    %cst_23 = arith.constant dense<0.000000e+00> : vector<32x128xf32>
    %49 = tpu.matmul %46, %2, %cst_23 {dimension_numbers = #tpu.dot_dimension_numbers<[1], [0], [0], [1], [0, 0, 1, 1], [], []>} : vector<32x32xf32>, vector<32x128xf32>, vector<32x128xf32> -> vector<32x128xf32>
    %50 = arith.addf %48, %49 : vector<32x128xf32>
    %51 = arith.negf %50 : vector<32x128xf32>
    %52 = math.exp %51 : vector<32x128xf32>
    %cst_24 = arith.constant 1.000000e+00 : f32
    %53 = vector.broadcast %cst_24 : f32 to vector<32x128xf32>
    %54 = arith.addf %53, %52 : vector<32x128xf32>
    %55 = arith.divf %53, %54 : vector<32x128xf32>
    %56 = math.tanh %50 : vector<32x128xf32>
    %57 = vector.extract_strided_slice %55 {offsets = [0, 32], sizes = [32, 32], strides = [1, 1]} : vector<32x128xf32> to vector<32x32xf32>
    %58 = arith.mulf %57, %43 : vector<32x32xf32>
    %59 = vector.extract_strided_slice %55 {offsets = [0, 0], sizes = [32, 32], strides = [1, 1]} : vector<32x128xf32> to vector<32x32xf32>
    %60 = vector.extract_strided_slice %56 {offsets = [0, 64], sizes = [32, 32], strides = [1, 1]} : vector<32x128xf32> to vector<32x32xf32>
    %61 = arith.mulf %59, %60 : vector<32x32xf32>
    %62 = arith.addf %58, %61 : vector<32x32xf32>
    %63 = vector.extract_strided_slice %55 {offsets = [0, 96], sizes = [32, 32], strides = [1, 1]} : vector<32x128xf32> to vector<32x32xf32>
    %64 = math.tanh %62 : vector<32x32xf32>
    %65 = arith.mulf %63, %64 : vector<32x32xf32>
    %c64_25 = arith.constant 64 : index
    %c0_26 = arith.constant 0 : index
    %66 = vector.load %arg13[%c64_25, %c0_26] : memref<128x32xf32, #tpu.memory_space<vmem>>, vector<32x32xf32>
    tpu.vector_store %arg13[%c64_25, %c0_26], %65 {strides = array<i32>} : memref<128x32xf32, #tpu.memory_space<vmem>>, vector<32x32xf32>,
    %c96 = arith.constant 96 : index
    %c0_27 = arith.constant 0 : index
    %67 = vector.load %arg12[%c96, %c0_27] : memref<128x128xf32, #tpu.memory_space<vmem>>, vector<32x128xf32>
    %cst_28 = arith.constant dense<0.000000e+00> : vector<32x128xf32>
    %68 = tpu.matmul %65, %2, %cst_28 {dimension_numbers = #tpu.dot_dimension_numbers<[1], [0], [0], [1], [0, 0, 1, 1], [], []>} : vector<32x32xf32>, vector<32x128xf32>, vector<32x128xf32> -> vector<32x128xf32>
    %69 = arith.addf %67, %68 : vector<32x128xf32>
    %70 = arith.negf %69 : vector<32x128xf32>
    %71 = math.exp %70 : vector<32x128xf32>
    %cst_29 = arith.constant 1.000000e+00 : f32
    %72 = vector.broadcast %cst_29 : f32 to vector<32x128xf32>
    %73 = arith.addf %72, %71 : vector<32x128xf32>
    %74 = arith.divf %72, %73 : vector<32x128xf32>
    %75 = math.tanh %69 : vector<32x128xf32>
    %76 = vector.extract_strided_slice %74 {offsets = [0, 32], sizes = [32, 32], strides = [1, 1]} : vector<32x128xf32> to vector<32x32xf32>
    %77 = arith.mulf %76, %62 : vector<32x32xf32>
    %78 = vector.extract_strided_slice %74 {offsets = [0, 0], sizes = [32, 32], strides = [1, 1]} : vector<32x128xf32> to vector<32x32xf32>
    %79 = vector.extract_strided_slice %75 {offsets = [0, 64], sizes = [32, 32], strides = [1, 1]} : vector<32x128xf32> to vector<32x32xf32>
    %80 = arith.mulf %78, %79 : vector<32x32xf32>
    %81 = arith.addf %77, %80 : vector<32x32xf32>
    %82 = vector.extract_strided_slice %74 {offsets = [0, 96], sizes = [32, 32], strides = [1, 1]} : vector<32x128xf32> to vector<32x32xf32>
    %83 = math.tanh %81 : vector<32x32xf32>
    %84 = arith.mulf %82, %83 : vector<32x32xf32>
    %c96_30 = arith.constant 96 : index
    %c0_31 = arith.constant 0 : index
    %85 = vector.load %arg13[%c96_30, %c0_31] : memref<128x32xf32, #tpu.memory_space<vmem>>, vector<32x32xf32>
    tpu.vector_store %arg13[%c96_30, %c0_31], %84 {strides = array<i32>} : memref<128x32xf32, #tpu.memory_space<vmem>>, vector<32x32xf32>,
    %c0_32 = arith.constant 0 : index
    %c0_33 = arith.constant 0 : index
    %86 = vector.load %arg13[%c0_32, %c0_33] : memref<128x32xf32, #tpu.memory_space<vmem>>, vector<128x32xf32>
    %c0_34 = arith.constant 0 : index
    %c0_35 = arith.constant 0 : index
    %87 = vector.load %arg4[%c0_34, %c0_35] : memref<32x128xf32, #tpu.memory_space<vmem>>, vector<32x128xf32>
    %c0_36 = arith.constant 0 : index
    %c0_37 = arith.constant 0 : index
    %88 = vector.load %arg5[%c0_36, %c0_37] : memref<32x128xf32, #tpu.memory_space<vmem>>, vector<32x128xf32>
    %c0_38 = arith.constant 0 : index
    %c0_39 = arith.constant 0 : index
    %89 = vector.load %arg6[%c0_38, %c0_39] : memref<1x128xf32, #tpu.memory_space<vmem>>, vector<1x128xf32>
    %cst_40 = arith.constant dense<0.000000e+00> : vector<128x128xf32>
    %90 = tpu.matmul %86, %87, %cst_40 {dimension_numbers = #tpu.dot_dimension_numbers<[1], [0], [0], [1], [0, 0, 1, 1], [], []>} : vector<128x32xf32>, vector<32x128xf32>, vector<128x128xf32> -> vector<128x128xf32>
    %91 = vector.broadcast %89 : vector<1x128xf32> to vector<128x128xf32>
    %92 = arith.addf %90, %91 : vector<128x128xf32>
    %c0_41 = arith.constant 0 : index
    %c0_42 = arith.constant 0 : index
    %93 = vector.load %arg12[%c0_41, %c0_42] : memref<128x128xf32, #tpu.memory_space<vmem>>, vector<128x128xf32>
    tpu.vector_store %arg12[%c0_41, %c0_42], %92 {strides = array<i32>} : memref<128x128xf32, #tpu.memory_space<vmem>>, vector<128x128xf32>,
    %cst_43 = arith.constant 0.000000e+00 : f32
    %94 = vector.broadcast %cst_43 : f32 to vector<32x32xf32>
    %cst_44 = arith.constant 0.000000e+00 : f32
    %95 = vector.broadcast %cst_44 : f32 to vector<32x32xf32>
    %c0_45 = arith.constant 0 : index
    %c0_46 = arith.constant 0 : index
    %96 = vector.load %arg12[%c0_45, %c0_46] : memref<128x128xf32, #tpu.memory_space<vmem>>, vector<32x128xf32>
    %cst_47 = arith.constant dense<0.000000e+00> : vector<32x128xf32>
    %97 = tpu.matmul %94, %88, %cst_47 {dimension_numbers = #tpu.dot_dimension_numbers<[1], [0], [0], [1], [0, 0, 1, 1], [], []>} : vector<32x32xf32>, vector<32x128xf32>, vector<32x128xf32> -> vector<32x128xf32>
    %98 = arith.addf %96, %97 : vector<32x128xf32>
    %99 = arith.negf %98 : vector<32x128xf32>
    %100 = math.exp %99 : vector<32x128xf32>
    %cst_48 = arith.constant 1.000000e+00 : f32
    %101 = vector.broadcast %cst_48 : f32 to vector<32x128xf32>
    %102 = arith.addf %101, %100 : vector<32x128xf32>
    %103 = arith.divf %101, %102 : vector<32x128xf32>
    %104 = math.tanh %98 : vector<32x128xf32>
    %105 = vector.extract_strided_slice %103 {offsets = [0, 32], sizes = [32, 32], strides = [1, 1]} : vector<32x128xf32> to vector<32x32xf32>
    %106 = arith.mulf %105, %95 : vector<32x32xf32>
    %107 = vector.extract_strided_slice %103 {offsets = [0, 0], sizes = [32, 32], strides = [1, 1]} : vector<32x128xf32> to vector<32x32xf32>
    %108 = vector.extract_strided_slice %104 {offsets = [0, 64], sizes = [32, 32], strides = [1, 1]} : vector<32x128xf32> to vector<32x32xf32>
    %109 = arith.mulf %107, %108 : vector<32x32xf32>
    %110 = arith.addf %106, %109 : vector<32x32xf32>
    %111 = vector.extract_strided_slice %103 {offsets = [0, 96], sizes = [32, 32], strides = [1, 1]} : vector<32x128xf32> to vector<32x32xf32>
    %112 = math.tanh %110 : vector<32x32xf32>
    %113 = arith.mulf %111, %112 : vector<32x32xf32>
    %c0_49 = arith.constant 0 : index
    %c0_50 = arith.constant 0 : index
    %114 = vector.load %arg13[%c0_49, %c0_50] : memref<128x32xf32, #tpu.memory_space<vmem>>, vector<32x32xf32>
    tpu.vector_store %arg13[%c0_49, %c0_50], %113 {strides = array<i32>} : memref<128x32xf32, #tpu.memory_space<vmem>>, vector<32x32xf32>,
    %c32_51 = arith.constant 32 : index
    %c0_52 = arith.constant 0 : index
    %115 = vector.load %arg12[%c32_51, %c0_52] : memref<128x128xf32, #tpu.memory_space<vmem>>, vector<32x128xf32>
    %cst_53 = arith.constant dense<0.000000e+00> : vector<32x128xf32>
    %116 = tpu.matmul %113, %88, %cst_53 {dimension_numbers = #tpu.dot_dimension_numbers<[1], [0], [0], [1], [0, 0, 1, 1], [], []>} : vector<32x32xf32>, vector<32x128xf32>, vector<32x128xf32> -> vector<32x128xf32>
    %117 = arith.addf %115, %116 : vector<32x128xf32>
    %118 = arith.negf %117 : vector<32x128xf32>
    %119 = math.exp %118 : vector<32x128xf32>
    %cst_54 = arith.constant 1.000000e+00 : f32
    %120 = vector.broadcast %cst_54 : f32 to vector<32x128xf32>
    %121 = arith.addf %120, %119 : vector<32x128xf32>
    %122 = arith.divf %120, %121 : vector<32x128xf32>
    %123 = math.tanh %117 : vector<32x128xf32>
    %124 = vector.extract_strided_slice %122 {offsets = [0, 32], sizes = [32, 32], strides = [1, 1]} : vector<32x128xf32> to vector<32x32xf32>
    %125 = arith.mulf %124, %110 : vector<32x32xf32>
    %126 = vector.extract_strided_slice %122 {offsets = [0, 0], sizes = [32, 32], strides = [1, 1]} : vector<32x128xf32> to vector<32x32xf32>
    %127 = vector.extract_strided_slice %123 {offsets = [0, 64], sizes = [32, 32], strides = [1, 1]} : vector<32x128xf32> to vector<32x32xf32>
    %128 = arith.mulf %126, %127 : vector<32x32xf32>
    %129 = arith.addf %125, %128 : vector<32x32xf32>
    %130 = vector.extract_strided_slice %122 {offsets = [0, 96], sizes = [32, 32], strides = [1, 1]} : vector<32x128xf32> to vector<32x32xf32>
    %131 = math.tanh %129 : vector<32x32xf32>
    %132 = arith.mulf %130, %131 : vector<32x32xf32>
    %c32_55 = arith.constant 32 : index
    %c0_56 = arith.constant 0 : index
    %133 = vector.load %arg13[%c32_55, %c0_56] : memref<128x32xf32, #tpu.memory_space<vmem>>, vector<32x32xf32>
    tpu.vector_store %arg13[%c32_55, %c0_56], %132 {strides = array<i32>} : memref<128x32xf32, #tpu.memory_space<vmem>>, vector<32x32xf32>,
    %c64_57 = arith.constant 64 : index
    %c0_58 = arith.constant 0 : index
    %134 = vector.load %arg12[%c64_57, %c0_58] : memref<128x128xf32, #tpu.memory_space<vmem>>, vector<32x128xf32>
    %cst_59 = arith.constant dense<0.000000e+00> : vector<32x128xf32>
    %135 = tpu.matmul %132, %88, %cst_59 {dimension_numbers = #tpu.dot_dimension_numbers<[1], [0], [0], [1], [0, 0, 1, 1], [], []>} : vector<32x32xf32>, vector<32x128xf32>, vector<32x128xf32> -> vector<32x128xf32>
    %136 = arith.addf %134, %135 : vector<32x128xf32>
    %137 = arith.negf %136 : vector<32x128xf32>
    %138 = math.exp %137 : vector<32x128xf32>
    %cst_60 = arith.constant 1.000000e+00 : f32
    %139 = vector.broadcast %cst_60 : f32 to vector<32x128xf32>
    %140 = arith.addf %139, %138 : vector<32x128xf32>
    %141 = arith.divf %139, %140 : vector<32x128xf32>
    %142 = math.tanh %136 : vector<32x128xf32>
    %143 = vector.extract_strided_slice %141 {offsets = [0, 32], sizes = [32, 32], strides = [1, 1]} : vector<32x128xf32> to vector<32x32xf32>
    %144 = arith.mulf %143, %129 : vector<32x32xf32>
    %145 = vector.extract_strided_slice %141 {offsets = [0, 0], sizes = [32, 32], strides = [1, 1]} : vector<32x128xf32> to vector<32x32xf32>
    %146 = vector.extract_strided_slice %142 {offsets = [0, 64], sizes = [32, 32], strides = [1, 1]} : vector<32x128xf32> to vector<32x32xf32>
    %147 = arith.mulf %145, %146 : vector<32x32xf32>
    %148 = arith.addf %144, %147 : vector<32x32xf32>
    %149 = vector.extract_strided_slice %141 {offsets = [0, 96], sizes = [32, 32], strides = [1, 1]} : vector<32x128xf32> to vector<32x32xf32>
    %150 = math.tanh %148 : vector<32x32xf32>
    %151 = arith.mulf %149, %150 : vector<32x32xf32>
    %c64_61 = arith.constant 64 : index
    %c0_62 = arith.constant 0 : index
    %152 = vector.load %arg13[%c64_61, %c0_62] : memref<128x32xf32, #tpu.memory_space<vmem>>, vector<32x32xf32>
    tpu.vector_store %arg13[%c64_61, %c0_62], %151 {strides = array<i32>} : memref<128x32xf32, #tpu.memory_space<vmem>>, vector<32x32xf32>,
    %c96_63 = arith.constant 96 : index
    %c0_64 = arith.constant 0 : index
    %153 = vector.load %arg12[%c96_63, %c0_64] : memref<128x128xf32, #tpu.memory_space<vmem>>, vector<32x128xf32>
    %cst_65 = arith.constant dense<0.000000e+00> : vector<32x128xf32>
    %154 = tpu.matmul %151, %88, %cst_65 {dimension_numbers = #tpu.dot_dimension_numbers<[1], [0], [0], [1], [0, 0, 1, 1], [], []>} : vector<32x32xf32>, vector<32x128xf32>, vector<32x128xf32> -> vector<32x128xf32>
    %155 = arith.addf %153, %154 : vector<32x128xf32>
    %156 = arith.negf %155 : vector<32x128xf32>
    %157 = math.exp %156 : vector<32x128xf32>
    %cst_66 = arith.constant 1.000000e+00 : f32
    %158 = vector.broadcast %cst_66 : f32 to vector<32x128xf32>
    %159 = arith.addf %158, %157 : vector<32x128xf32>
    %160 = arith.divf %158, %159 : vector<32x128xf32>
    %161 = math.tanh %155 : vector<32x128xf32>
    %162 = vector.extract_strided_slice %160 {offsets = [0, 32], sizes = [32, 32], strides = [1, 1]} : vector<32x128xf32> to vector<32x32xf32>
    %163 = arith.mulf %162, %148 : vector<32x32xf32>
    %164 = vector.extract_strided_slice %160 {offsets = [0, 0], sizes = [32, 32], strides = [1, 1]} : vector<32x128xf32> to vector<32x32xf32>
    %165 = vector.extract_strided_slice %161 {offsets = [0, 64], sizes = [32, 32], strides = [1, 1]} : vector<32x128xf32> to vector<32x32xf32>
    %166 = arith.mulf %164, %165 : vector<32x32xf32>
    %167 = arith.addf %163, %166 : vector<32x32xf32>
    %168 = vector.extract_strided_slice %160 {offsets = [0, 96], sizes = [32, 32], strides = [1, 1]} : vector<32x128xf32> to vector<32x32xf32>
    %169 = math.tanh %167 : vector<32x32xf32>
    %170 = arith.mulf %168, %169 : vector<32x32xf32>
    %c96_67 = arith.constant 96 : index
    %c0_68 = arith.constant 0 : index
    %171 = vector.load %arg13[%c96_67, %c0_68] : memref<128x32xf32, #tpu.memory_space<vmem>>, vector<32x32xf32>
    tpu.vector_store %arg13[%c96_67, %c0_68], %170 {strides = array<i32>} : memref<128x32xf32, #tpu.memory_space<vmem>>, vector<32x32xf32>,
    %c0_69 = arith.constant 0 : index
    %c0_70 = arith.constant 0 : index
    %172 = vector.load %arg13[%c0_69, %c0_70] : memref<128x32xf32, #tpu.memory_space<vmem>>, vector<128x32xf32>
    %c0_71 = arith.constant 0 : index
    %c0_72 = arith.constant 0 : index
    %173 = vector.load %arg7[%c0_71, %c0_72] : memref<32x16xf32, #tpu.memory_space<vmem>>, vector<32x16xf32>
    %cst_73 = arith.constant dense<0.000000e+00> : vector<128x16xf32>
    %174 = tpu.matmul %172, %173, %cst_73 {dimension_numbers = #tpu.dot_dimension_numbers<[1], [0], [0], [1], [0, 0, 1, 1], [], []>} : vector<128x32xf32>, vector<32x16xf32>, vector<128x16xf32> -> vector<128x16xf32>
    %c0_74 = arith.constant 0 : index
    %c0_75 = arith.constant 0 : index
    %175 = vector.load %arg8[%c0_74, %c0_75] : memref<1x16xf32, #tpu.memory_space<vmem>>, vector<1x16xf32>
    %176 = vector.broadcast %175 : vector<1x16xf32> to vector<128x16xf32>
    %177 = arith.addf %174, %176 : vector<128x16xf32>
    %178 = math.tanh %177 : vector<128x16xf32>
    %c0_76 = arith.constant 0 : index
    %c0_77 = arith.constant 0 : index
    %179 = vector.load %arg9[%c0_76, %c0_77] : memref<16x10xf32, #tpu.memory_space<vmem>>, vector<16x10xf32>
    %cst_78 = arith.constant dense<0.000000e+00> : vector<128x10xf32>
    %180 = tpu.matmul %178, %179, %cst_78 {dimension_numbers = #tpu.dot_dimension_numbers<[1], [0], [0], [1], [0, 0, 1, 1], [], []>} : vector<128x16xf32>, vector<16x10xf32>, vector<128x10xf32> -> vector<128x10xf32>
    %c0_79 = arith.constant 0 : index
    %c0_80 = arith.constant 0 : index
    %181 = vector.load %arg10[%c0_79, %c0_80] : memref<1x10xf32, #tpu.memory_space<vmem>>, vector<1x10xf32>
    %182 = vector.broadcast %181 : vector<1x10xf32> to vector<128x10xf32>
    %183 = arith.addf %180, %182 : vector<128x10xf32>
    %184 = math.tanh %183 : vector<128x10xf32>
    %cst_81 = arith.constant dense<0xFF800000> : vector<128xf32>
    %185 = vector.multi_reduction <maximumf>, %184, %cst_81 [1] : vector<128x10xf32> to vector<128xf32>
    %186 = vector.shape_cast %185 : vector<128xf32> to vector<128x1xf32>
    %187 = vector.broadcast %186 : vector<128x1xf32> to vector<128x10xf32>
    %188 = arith.subf %184, %187 : vector<128x10xf32>
    %189 = math.exp %188 : vector<128x10xf32>
    %cst_82 = arith.constant dense<0.000000e+00> : vector<128xf32>
    %190 = vector.multi_reduction <add>, %189, %cst_82 [1] : vector<128x10xf32> to vector<128xf32>
    %191 = vector.shape_cast %190 : vector<128xf32> to vector<128x1xf32>
    %192 = math.log %191 : vector<128x1xf32>
    %193 = vector.broadcast %192 : vector<128x1xf32> to vector<128x10xf32>
    %194 = arith.subf %188, %193 : vector<128x10xf32>
    %c0_83 = arith.constant 0 : index
    %c0_84 = arith.constant 0 : index
    %195 = vector.load %arg11[%c0_83, %c0_84] : memref<128x10xf32, #tpu.memory_space<vmem>>, vector<128x10xf32>
    tpu.vector_store %arg11[%c0_83, %c0_84], %194 {strides = array<i32>} : memref<128x10xf32, #tpu.memory_space<vmem>>, vector<128x10xf32>,
    return
  }
}

</mosaic_0001>

<bundles_post_ra>
// kernel: predicter_rnn_forward.1
= control target key start
LH: loop header
LB: loop body
LE: loop exit
PB: predicated region body
PF: predicated region fallthrough
CT: control target
= control target key end

     0   :  { %v3793_v3 = vmov 0.0   ;;  %vm67_vm0 = vcmask 130048   ;;  %s3794_s18 = smov 64   ;;  %s3795_s19 = smov 32   ;;  %vm281_vm1 = vcmask 261120   ;;  %vm2695_vm2 = vcmask 80896   ;;  %s4779_s1 = inlined_call_operand.vmem [shape: f32[16,128], index: 1, kind: input, shape index: {}]   ;;  %s4780_s2 = inlined_call_operand.vmem [shape: f32[32,128], index: 2, kind: input, shape index: {}]   ;;  %s4781_s0 = inlined_call_operand.vmem [shape: f32[128,16], index: 0, kind: input, shape index: {}]   ;;  %s4782_s3 = inlined_call_operand.vmem [shape: f32[1,128], index: 3, kind: input, shape index: {}]   ;;  %s4783_s4 = inlined_call_operand.vmem [shape: f32[32,128], index: 4, kind: input, shape index: {}]   ;;  %s4784_s5 = inlined_call_operand.vmem [shape: f32[32,128], index: 5, kind: input, shape index: {}]   ;;  %s4785_s6 = inlined_call_operand.vmem [shape: f32[1,128], index: 6, kind: input, shape index: {}]   ;;  %s4786_s7 = inlined_call_operand.vmem [shape: f32[32,16], index: 7, kind: input, shape index: {}]   ;;  %s4787_s9 = inlined_call_operand.vmem [shape: f32[16,10], index: 9, kind: input, shape index: {}]   ;;  %s4788_s8 = inlined_call_operand.vmem [shape: f32[1,16], index: 8, kind: input, shape index: {}]   ;;  %s4789_s10 = inlined_call_operand.vmem [shape: f32[1,10], index: 10, kind: input, shape index: {}]   ;;  %s4790_s11 = inlined_call_operand.vmem [shape: f32[128,10], index: 11, kind: output, shape index: {}]  }
   0x1   :  { %v55_v0 = vld [vmem:[%s4779_s1 + $0x8] sm:$0xff]  ;;  %v3862_v1 = vld [vmem:[%s4780_s2 + $0x18] sm:$0xff]  ;;  %v54_v2 = vld [vmem:[%s4779_s1] sm:$0xff]  ;;  %3208 = vmatprep.mubr.f32.mxu1 %v3793_v3 }
   0x2   :  { %3172 = vmatprep.subr.mxu0 %v55_v0  ;;  %3200 = vmatprep.subr.mxu1 %v3862_v1  ;;  %v3872_v4 = vld [vmem:[%s4780_s2 + $0x10] sm:$0xff]  ;;  %v38_v5 = vld [vmem:[%s4781_s0] sm:$0xff]  ;;  %v39_v6 = vld [vmem:[%s4781_s0 + $0x8] sm:$0xff] }
   0x3   :  { %3173 = vmatpush3.msra.mxu0 %v55_v0  ;;  %3201 = vmatpush3.msra.mxu1 %v3862_v1  ;;  %v3885_v7 = vld [vmem:[%s4780_s2 + $0x8] sm:$0xff]  ;;  %v40_v8 = vld [vmem:[%s4781_s0 + $0x10] sm:$0xff]  ;;  %v3896_v9 = vld [vmem:[%s4780_s2] sm:$0xff] }
   0x4   :  { %3174 = vmatprep.subr.mxu0 %v54_v2  ;;  %3202 = vmatprep.subr.mxu1 %v3872_v4  ;;  %v41_v10 = vld [vmem:[%s4781_s0 + $0x18] sm:$0xff]  ;;  %v3922_v13 = vld [vmem:[%s4782_s3] ss:$0 sm:$0xff] }
   0x5   :  { %3175 = vmatpush3.msra.mxu0 %v54_v2  ;;  %3176 = vmatprep.mubr.msk.f32.mxu0 %vm67_vm0, %v38_v5 }
   0x6   :  { %3203 = vmatpush3.msra.mxu1 %v3872_v4  ;;  %3177 = vmatmul.mubr.msk.f32.vlgmr.msra.gmra.mxu0 %vm67_vm0, %v39_v6 }
   0x7   :  { %3204 = vmatprep.subr.mxu1 %v3885_v7  ;;  %3179 = vmatprep.mubr.msk.f32.mxu0 %vm67_vm0, %v40_v8  ;;  %v42_v8 = vld [vmem:[%s4781_s0 + $0x20] sm:$0xff] }
   0x8   :  { %3205 = vmatpush3.msra.mxu1 %v3885_v7 }
   0x9   :  { %3206 = vmatprep.subr.mxu1 %v3896_v9 }
   0xa   :  { %3207 = vmatpush3.msra.mxu1 %v3896_v9  ;;  %3180 = vmatmul.mubr.msk.f32.gmra.mxu0 %vm67_vm0, %v41_v10  ;;  %v43_v10 = vld [vmem:[%s4781_s0 + $0x28] sm:$0xff] }
   0xb   :  { %3209 = vmatmul.mubr.f32.vlgmr.msra.gmra.mxu1 %v3793_v3  ;;  %3214 = vmatprep.subr.mxu1 %v3862_v1 }
   0xc   :  { %3211 = vmatprep.mubr.f32.mxu1 %v3793_v3  ;;  %3215 = vmatpush3.msra.mxu1 %v3862_v1 }
   0xd   :  { %3216 = vmatprep.subr.mxu1 %v3872_v4  ;;  %3182 = vmatprep.mubr.msk.f32.mxu0 %vm67_vm0, %v42_v8 }
   0xe   :  { %3217 = vmatpush3.msra.mxu1 %v3872_v4  ;;  %3183 = vmatmul.mubr.msk.f32.gmra.mxu0 %vm67_vm0, %v43_v10 }
   0xf   :  { %3212 = vmatmul.mubr.f32.gmra.mxu1 %v3793_v3  ;;  %3218 = vmatprep.subr.mxu1 %v3885_v7 }
  0x10   :  { %3219 = vmatpush3.msra.mxu1 %v3885_v7 }
  0x11   :  { %3220 = vmatprep.subr.mxu1 %v3896_v9 }
  0x12   :  { %3221 = vmatpush3.msra.mxu1 %v3896_v9 }
  0x13   :  { %3228 = vmatprep.subr.mxu1 %v3862_v1 }
  0xc6   :  { %v3178_v11 = vpop.f32.mrf.mxu0 }
  0xc7   :  { %v188_v16 = vadd.f32 %v3178_v11, %v3922_v13  ;;  %v44_v11 = vld [vmem:[%s4781_s0 + $0x30] sm:$0xff] }
  0xc8   :  { %v182_v12 = vpop.f32.mrf.mxu0  ;;  %3185 = vmatprep.mubr.msk.f32.mxu0 %vm67_vm0, %v44_v11 }
  0xc9   :  { %v183_v17 = vadd.f32 %v3922_v13, %v182_v12 }
  0xca   :  { %v3181_v14 = vpop.f32.mrf.mxu0 }
  0xcb   :  { %v3210_v15 = vpop.f32.mrf.mxu1  ;;  %v198_v24 = vadd.f32 %v3181_v14, %v3922_v13  ;;  %v45_v14 = vld [vmem:[%s4781_s0 + $0x38] sm:$0xff] }
  0xcc   :  { %v192_v18 = vpop.f32.mrf.mxu0  ;;  %v371_v22 = vadd.f32 %v3210_v15, %v188_v16  ;;  %v46_v15 = vld [vmem:[%s4781_s0 + $0x40] sm:$0xff]  ;;  %3186 = vmatmul.mubr.msk.f32.gmra.mxu0 %vm67_vm0, %v45_v14 }
  0xcd   :  { %v351_v19 = vpop.f32.mrf.mxu1  ;;  %v193_v23 = vadd.f32 %v3922_v13, %v192_v18  ;;  %3188 = vmatprep.mubr.msk.f32.mxu0 %vm67_vm0, %v46_v15  ;;  %v47_v18 = vld [vmem:[%s4781_s0 + $0x48] sm:$0xff] }
  0xce   :  { %v370_v20 = vadd.f32 %v351_v19, %v183_v17  ;;  %v2926_v33 = vmul.f32 -1.442695, %v371_v22  ;;  %v48_v19 = vld [vmem:[%s4781_s0 + $0x50] sm:$0xff] }
  0xcf   :  { %v3213_v21 = vpop.f32.mrf.mxu1 }
  0xd0   :  { %3407 = vtanh.f32 %v370_v20  ;;  %v373_v27 = vadd.f32 %v3213_v21, %v198_v24  ;;  %v2925_v32 = vmul.f32 -1.442695, %v370_v20  ;;  %3189 = vmatmul.mubr.msk.f32.gmra.mxu0 %vm67_vm0, %v47_v18  ;;  %v49_v21 = vld [vmem:[%s4781_s0 + $0x58] sm:$0xff] }
  0xd1   :  { %v361_v25 = vpop.f32.mrf.mxu1  ;;  %3409 = vtanh.f32 %v371_v22  ;;  %3191 = vmatprep.mubr.msk.f32.mxu0 %vm67_vm0, %v48_v19  ;;  %v50_v22 = vld [vmem:[%s4781_s0 + $0x60] sm:$0xff]  ;;  %v1160_v24 = vld [vmem:[%s4783_s4 + $0x18] sm:$0xff] }
  0xd2   :  { %v372_v26 = vadd.f32 %v361_v25, %v193_v23  ;;  %v2928_v35 = vmul.f32 -1.442695, %v373_v27  ;;  %v51_v23 = vld [vmem:[%s4781_s0 + $0x68] sm:$0xff]  ;;  %3256 = vmatprep.subr.mxu0 %v1160_v24  ;;  %v52_v25 = vld [vmem:[%s4781_s0 + $0x70] sm:$0xff] }
  0xd3   :  { %3257 = vmatpush3.msra.mxu0 %v1160_v24 }
  0xd4   :  { %3411 = vtanh.f32 %v372_v26  ;;  %v2927_v34 = vmul.f32 -1.442695, %v372_v26  ;;  %3192 = vmatmul.mubr.msk.f32.gmra.mxu0 %vm67_vm0, %v49_v21  ;;  %v1159_v26 = vld [vmem:[%s4783_s4 + $0x10] sm:$0xff] }
  0xd5   :  { %3413 = vtanh.f32 %v373_v27  ;;  %3194 = vmatprep.mubr.msk.f32.mxu0 %vm67_vm0, %v50_v22  ;;  %v53_v27 = vld [vmem:[%s4781_s0 + $0x78] sm:$0xff]  ;;  %3258 = vmatprep.subr.mxu0 %v1159_v26 }
  0xd6   :  { %3415 = vpow2.f32 %v2925_v32  ;;  %3259 = vmatpush3.msra.mxu0 %v1159_v26 }
  0xd7   :  { %3417 = vpow2.f32 %v2926_v33 }
  0xd8   :  { %3419 = vpow2.f32 %v2927_v34  ;;  %3195 = vmatmul.mubr.msk.f32.gmra.mxu0 %vm67_vm0, %v51_v23 }
  0xd9   :  { %3421 = vpow2.f32 %v2928_v35  ;;  %3197 = vmatprep.mubr.msk.f32.mxu0 %vm67_vm0, %v52_v25 }
  0xdc   :  { %3198 = vmatmul.mubr.msk.f32.gmra.mxu0 %vm67_vm0, %v53_v27 }
  0xdd   :  { %v3408_v28 = vpop.eup %3407 }
  0xde   :  { %410 = vrot.lane.b32.xlu0 %v3408_v28, %s3794_s18  ;;  %v3410_v29 = vpop.eup %3409  ;;  %v1158_v28 = vld [vmem:[%s4783_s4 + $0x8] sm:$0xff] }
  0xdf   :  { %3260 = vmatprep.subr.mxu0 %v1158_v28 }
  0xe0   :  { %3261 = vmatpush3.msra.mxu0 %v1158_v28 }
  0xe1   :  { %v3412_v30 = vpop.eup %3411 }
  0xe2   :  { %414 = vrot.lane.b32.xlu1 %v3412_v30, %s3794_s18  ;;  %412 = vrot.lane.b32.xlu0 %v3410_v29, %s3794_s18  ;;  %v3414_v31 = vpop.eup %3413  ;;  %v1157_v29 = vld [vmem:[%s4783_s4] sm:$0xff] }
  0xe3   :  { %v3416_v36 = vpop.eup %3415  ;;  %3262 = vmatprep.subr.mxu0 %v1157_v29 }
  0xe4   :  { %v3418_v37 = vpop.eup %3417  ;;  %v386_v38 = vadd.f32 1.0, %v3416_v36  ;;  %3263 = vmatpush3.msra.mxu0 %v1157_v29 }
  0xe5   :  { %v3420_v39 = vpop.eup %3419  ;;  %v387_v40 = vadd.f32 1.0, %v3418_v37 }
  0xe6   :  { %416 = vrot.lane.b32.xlu1 %v3414_v31, %s3794_s18  ;;  %3423 = vrcp.f32 %v386_v38  ;;  %v388_v41 = vadd.f32 1.0, %v3420_v39  ;;  %v3422_v42 = vpop.eup %3421 }
  0xe7   :  { %3425 = vrcp.f32 %v387_v40  ;;  %v389_v43 = vadd.f32 1.0, %v3422_v42 }
  0xe8   :  { %3427 = vrcp.f32 %v388_v41 }
  0xe9   :  { %3429 = vrcp.f32 %v389_v43 }
  0xf3   :  { %v3932_v44 = vpop.eup %3423 }
  0xf4   :  { %v3935_v47 = vpop.eup %3425  ;;  %v402_v56 = vmul.f32 0.0, %v3932_v44 }
  0xf5   :  { %v3938_v48 = vpop.eup %3427  ;;  %v403_v59 = vmul.f32 0.0, %v3935_v47 }
  0xf6   :  { %v3944_v53 = vpop.eup %3429  ;;  %v404_v60 = vmul.f32 0.0, %v3938_v48 }
  0xf7   :  { %v405_v2 = vmul.f32 0.0, %v3944_v53 }
 0x150   :  { %v411_v45 = vpop.permute.xlu0 %410 }
 0x151   :  { %v422_v46 = vmul.f32 %v3932_v44, %v411_v45 }
 0x153   :  { %430 = vrot.lane.b32.xlu0 %v422_v46, %s3795_s19  ;;  %v3184_v46 = vpop.f32.mrf.mxu0 }
 0x154   :  { %v415_v49 = vpop.permute.xlu1 %414  ;;  %v413_v50 = vpop.permute.xlu0 %412 }
 0x155   :  { %v424_v51 = vmul.f32 %v3938_v48, %v415_v49  ;;  %v423_v52 = vmul.f32 %v3935_v47, %v413_v50 }
 0x157   :  { %432 = vrot.lane.b32.xlu1 %v423_v52, %s3795_s19  ;;  %434 = vrot.lane.b32.xlu0 %v424_v51, %s3795_s19 }
 0x158   :  { %v417_v54 = vpop.permute.xlu1 %416 }
 0x159   :  { %v425_v55 = vmul.f32 %v3944_v53, %v417_v54 }
 0x15b   :  { %436 = vrot.lane.b32.xlu1 %v425_v55, %s3795_s19 }
 0x1c5   :  { %v431_v57 = vpop.permute.xlu0 %430 }
 0x1c6   :  { %v3949_v58 = vadd.f32 %v431_v57, %v402_v56 }
 0x1c8   :  { %3431 = vtanh.f32 %v3949_v58 }
 0x1c9   :  { %v433_v61 = vpop.permute.xlu1 %432  ;;  %v435_v62 = vpop.permute.xlu0 %434 }
 0x1ca   :  { %v3954_v63 = vadd.f32 %v433_v61, %v403_v59  ;;  %v3956_v0 = vadd.f32 %v435_v62, %v404_v60 }
 0x1cc   :  { %3433 = vtanh.f32 %v3954_v63 }
 0x1cd   :  { %3435 = vtanh.f32 %v3956_v0  ;;  %v437_v5 = vpop.permute.xlu1 %436 }
 0x1ce   :  { %v3961_v6 = vadd.f32 %v437_v5, %v405_v2 }
 0x1d0   :  { %3437 = vtanh.f32 %v3961_v6 }
 0x1d5   :  { %v3432_v12 = vpop.eup %3431 }
 0x1d6   :  { %454 = vrot.lane.b32.xlu0 %v3432_v12, %s3794_s18 }
 0x1d9   :  { %v3434_v16 = vpop.eup %3433 }
 0x1da   :  { %v3436_v17 = vpop.eup %3435  ;;  %456 = vrot.lane.b32.xlu1 %v3434_v16, %s3794_s18 }
 0x1db   :  { %458 = vrot.lane.b32.xlu0 %v3436_v17, %s3794_s18 }
 0x1dd   :  { %v3438_v20 = vpop.eup %3437 }
 0x1de   :  { %460 = vrot.lane.b32.xlu1 %v3438_v20, %s3794_s18 }
 0x248   :  { %v455_v30 = vpop.permute.xlu0 %454 }
 0x249   :  { %v466_v31 = vmul.f32 %v3932_v44, %v455_v30 }
 0x24b   :  { %474 = vrot.lane.b32.xlu0 %v466_v31, %s3795_s19 }
 0x24c   :  { %v457_v32 = vpop.permute.xlu1 %456 }
 0x24d   :  { %v467_v33 = vmul.f32 %v3935_v47, %v457_v32  ;;  %v459_v34 = vpop.permute.xlu0 %458  ;;  %v202_v47 = vpop.f32.mrf.mxu0 }
 0x24e   :  { %v468_v35 = vmul.f32 %v3938_v48, %v459_v34  ;;  %v208_v48 = vadd.f32 %v3184_v46, %v3922_v13  ;;  %v203_v51 = vadd.f32 %v3922_v13, %v202_v47 }
 0x24f   :  { %476 = vrot.lane.b32.xlu1 %v467_v33, %s3795_s19  ;;  %v3187_v49 = vpop.f32.mrf.mxu0 }
 0x250   :  { %478 = vrot.lane.b32.xlu0 %v468_v35, %s3795_s19  ;;  %v461_v36 = vpop.permute.xlu1 %460  ;;  %v218_v52 = vadd.f32 %v3187_v49, %v3922_v13 }
 0x251   :  { %v469_v37 = vmul.f32 %v3944_v53, %v461_v36  ;;  %v212_v56 = vpop.f32.mrf.mxu0 }
 0x252   :  { %v213_v59 = vadd.f32 %v3922_v13, %v212_v56 }
 0x253   :  { %480 = vrot.lane.b32.xlu1 %v469_v37, %s3795_s19 }
 0x2bd   :  { %v475_v38 = vpop.permute.xlu0 %474 }
 0x2be   :  { %486 = vst.msk [vmem:[#allocation3] sm:$0xff] %vm281_vm1, %v475_v38  ;;  %3222 = vmatprep.mubr.msk.f32.mxu1 %vm281_vm1, %v475_v38 }
 0x2c1   :  { %v477_v39 = vpop.permute.xlu1 %476 }
 0x2c2   :  { %487 = vst.msk [vmem:[#allocation3 + $0x8] sm:$0xff] %vm281_vm1, %v477_v39  ;;  %v479_v40 = vpop.permute.xlu0 %478  ;;  %3223 = vmatmul.mubr.msk.f32.vlgmr.msra.gmra.mxu1 %vm281_vm1, %v477_v39 }
 0x2c3   :  { %488 = vst.msk [vmem:[#allocation3 + $0x10] sm:$0xff] %vm281_vm1, %v479_v40  ;;  %3225 = vmatprep.mubr.msk.f32.mxu1 %vm281_vm1, %v479_v40  ;;  %3229 = vmatpush3.msra.mxu1 %v3862_v1 }
 0x2c4   :  { %3230 = vmatprep.subr.mxu1 %v3872_v4 }
 0x2c5   :  { %v481_v41 = vpop.permute.xlu1 %480  ;;  %v1141_v42 = vld [vmem:[#allocation3] sm:$0xff]  ;;  %3231 = vmatpush3.msra.mxu1 %v3872_v4 }
 0x2c6   :  { %489 = vst.msk [vmem:[#allocation3 + $0x18] sm:$0xff] %vm281_vm1, %v481_v41  ;;  %3226 = vmatmul.mubr.msk.f32.gmra.mxu1 %vm281_vm1, %v481_v41  ;;  %3264 = vmatprep.mubr.msk.f32.mxu0 %vm281_vm1, %v1141_v42 }
 0x2c7   :  { %3232 = vmatprep.subr.mxu1 %v3885_v7 }
 0x2c8   :  { %3233 = vmatpush3.msra.mxu1 %v3885_v7 }
 0x2c9   :  { %v1142_v43 = vld [vmem:[#allocation3 + $0x8] sm:$0xff]  ;;  %3234 = vmatprep.subr.mxu1 %v3896_v9 }
 0x2ca   :  { %3265 = vmatmul.mubr.msk.f32.vlgmr.msra.gmra.mxu0 %vm281_vm1, %v1142_v43  ;;  %v1143_v44 = vld [vmem:[#allocation3 + $0x10] sm:$0xff]  ;;  %3235 = vmatpush3.msra.mxu1 %v3896_v9 }
 0x2cb   :  { %3267 = vmatprep.mubr.msk.f32.mxu0 %vm281_vm1, %v1143_v44  ;;  %3242 = vmatprep.subr.mxu1 %v3862_v1 }
 0x2cd   :  { %v1144_v45 = vld [vmem:[#allocation3 + $0x18] sm:$0xff] }
 0x2ce   :  { %3268 = vmatmul.mubr.msk.f32.gmra.mxu0 %vm281_vm1, %v1144_v45 }
 0x382   :  { %v3224_v50 = vpop.f32.mrf.mxu1 }
 0x383   :  { %v588_v53 = vadd.f32 %v3224_v50, %v208_v48 }
 0x384   :  { %v568_v54 = vpop.f32.mrf.mxu1 }
 0x385   :  { %3439 = vtanh.f32 %v588_v53  ;;  %v587_v55 = vadd.f32 %v568_v54, %v203_v51  ;;  %v2934_v11 = vmul.f32 -1.442695, %v588_v53 }
 0x386   :  { %v3227_v57 = vpop.f32.mrf.mxu1 }
 0x387   :  { %v590_v60 = vadd.f32 %v3227_v57, %v218_v52  ;;  %3441 = vtanh.f32 %v587_v55  ;;  %v2933_v12 = vmul.f32 -1.442695, %v587_v55 }
 0x388   :  { %v578_v61 = vpop.f32.mrf.mxu1 }
 0x389   :  { %v589_v62 = vadd.f32 %v578_v61, %v213_v59  ;;  %3443 = vtanh.f32 %v590_v60  ;;  %v2936_v14 = vmul.f32 -1.442695, %v590_v60 }
 0x38b   :  { %3445 = vtanh.f32 %v589_v62  ;;  %v2935_v15 = vmul.f32 -1.442695, %v589_v62 }
 0x38c   :  { %3447 = vpow2.f32 %v2934_v11 }
 0x38d   :  { %3449 = vpow2.f32 %v2933_v12 }
 0x38e   :  { %3451 = vpow2.f32 %v2936_v14 }
 0x38f   :  { %3453 = vpow2.f32 %v2935_v15 }
 0x392   :  { %v3440_v2 = vpop.eup %3439 }
 0x393   :  { %629 = vrot.lane.b32.xlu1 %v3440_v2, %s3794_s18  ;;  %v3190_v2 = vpop.f32.mrf.mxu0 }
 0x394   :  { %v3442_v5 = vpop.eup %3441 }
 0x395   :  { %627 = vrot.lane.b32.xlu0 %v3442_v5, %s3794_s18  ;;  %v222_v5 = vpop.f32.mrf.mxu0 }
 0x396   :  { %v3444_v8 = vpop.eup %3443  ;;  %v223_v11 = vadd.f32 %v3922_v13, %v222_v5 }
 0x397   :  { %633 = vrot.lane.b32.xlu1 %v3444_v8, %s3794_s18  ;;  %v3193_v8 = vpop.f32.mrf.mxu0 }
 0x398   :  { %v3446_v10 = vpop.eup %3445  ;;  %v238_v12 = vadd.f32 %v3193_v8, %v3922_v13 }
 0x399   :  { %631 = vrot.lane.b32.xlu0 %v3446_v10, %s3794_s18  ;;  %v3448_v16 = vpop.eup %3447 }
 0x39a   :  { %v3450_v17 = vpop.eup %3449  ;;  %v604_v18 = vadd.f32 1.0, %v3448_v16  ;;  %v232_v16 = vpop.f32.mrf.mxu0 }
 0x39b   :  { %v3452_v19 = vpop.eup %3451  ;;  %v603_v20 = vadd.f32 1.0, %v3450_v17 }
 0x39c   :  { %v3454_v21 = vpop.eup %3453  ;;  %3455 = vrcp.f32 %v604_v18  ;;  %v606_v22 = vadd.f32 1.0, %v3452_v19  ;;  %v233_v18 = vadd.f32 %v3922_v13, %v232_v16 }
 0x39d   :  { %3457 = vrcp.f32 %v603_v20  ;;  %v605_v23 = vadd.f32 1.0, %v3454_v21 }
 0x39e   :  { %3459 = vrcp.f32 %v606_v22 }
 0x39f   :  { %3461 = vrcp.f32 %v605_v23 }
 0x3a9   :  { %v3456_v24 = vpop.eup %3455 }
 0x3aa   :  { %v3458_v27 = vpop.eup %3457  ;;  %v620_v36 = vmul.f32 %v3456_v24, %v3954_v63 }
 0x3ab   :  { %v3460_v30 = vpop.eup %3459  ;;  %v619_v39 = vmul.f32 %v3458_v27, %v3949_v58 }
 0x3ac   :  { %v3462_v33 = vpop.eup %3461  ;;  %v622_v42 = vmul.f32 %v3460_v30, %v3961_v6 }
 0x3ad   :  { %v621_v45 = vmul.f32 %v3462_v33, %v3956_v0 }
 0x405   :  { %v630_v25 = vpop.permute.xlu1 %629 }
 0x406   :  { %v640_v26 = vmul.f32 %v3456_v24, %v630_v25 }
 0x407   :  { %v628_v28 = vpop.permute.xlu0 %627 }
 0x408   :  { %649 = vrot.lane.b32.xlu1 %v640_v26, %s3795_s19  ;;  %v639_v29 = vmul.f32 %v3458_v27, %v628_v28 }
 0x409   :  { %v634_v31 = vpop.permute.xlu1 %633 }
 0x40a   :  { %v642_v32 = vmul.f32 %v3460_v30, %v634_v31  ;;  %647 = vrot.lane.b32.xlu0 %v639_v29, %s3795_s19 }
 0x40b   :  { %v632_v34 = vpop.permute.xlu0 %631 }
 0x40c   :  { %v641_v35 = vmul.f32 %v3462_v33, %v632_v34  ;;  %653 = vrot.lane.b32.xlu1 %v642_v32, %s3795_s19 }
 0x40e   :  { %651 = vrot.lane.b32.xlu0 %v641_v35, %s3795_s19 }
 0x47a   :  { %v650_v37 = vpop.permute.xlu1 %649 }
 0x47b   :  { %v4069_v38 = vadd.f32 %v650_v37, %v620_v36 }
 0x47c   :  { %v648_v40 = vpop.permute.xlu0 %647 }
 0x47d   :  { %3463 = vtanh.f32 %v4069_v38  ;;  %v4073_v41 = vadd.f32 %v648_v40, %v619_v39 }
 0x47e   :  { %v654_v43 = vpop.permute.xlu1 %653 }
 0x47f   :  { %3465 = vtanh.f32 %v4073_v41  ;;  %v4077_v44 = vadd.f32 %v654_v43, %v622_v42 }
 0x480   :  { %v652_v63 = vpop.permute.xlu0 %651 }
 0x481   :  { %3467 = vtanh.f32 %v4077_v44  ;;  %v4081_v46 = vadd.f32 %v652_v63, %v621_v45 }
 0x483   :  { %3469 = vtanh.f32 %v4081_v46 }
 0x48a   :  { %v3464_v58 = vpop.eup %3463 }
 0x48b   :  { %673 = vrot.lane.b32.xlu1 %v3464_v58, %s3794_s18 }
 0x48c   :  { %v3466_v47 = vpop.eup %3465 }
 0x48d   :  { %671 = vrot.lane.b32.xlu0 %v3466_v47, %s3794_s18 }
 0x48e   :  { %v3468_v6 = vpop.eup %3467 }
 0x48f   :  { %677 = vrot.lane.b32.xlu1 %v3468_v6, %s3794_s18 }
 0x490   :  { %v3470_v48 = vpop.eup %3469 }
 0x491   :  { %675 = vrot.lane.b32.xlu0 %v3470_v48, %s3794_s18 }
 0x4fd   :  { %v674_v0 = vpop.permute.xlu1 %673 }
 0x4fe   :  { %v684_v49 = vmul.f32 %v3456_v24, %v674_v0 }
 0x4ff   :  { %v672_v50 = vpop.permute.xlu0 %671 }
 0x500   :  { %693 = vrot.lane.b32.xlu1 %v684_v49, %s3795_s19  ;;  %v683_v51 = vmul.f32 %v3458_v27, %v672_v50 }
 0x501   :  { %v678_v52 = vpop.permute.xlu1 %677 }
 0x502   :  { %v686_v53 = vmul.f32 %v3460_v30, %v678_v52  ;;  %691 = vrot.lane.b32.xlu0 %v683_v51, %s3795_s19 }
 0x503   :  { %v676_v54 = vpop.permute.xlu0 %675 }
 0x504   :  { %v685_v55 = vmul.f32 %v3462_v33, %v676_v54  ;;  %697 = vrot.lane.b32.xlu1 %v686_v53, %s3795_s19 }
 0x506   :  { %695 = vrot.lane.b32.xlu0 %v685_v55, %s3795_s19 }
 0x572   :  { %v694_v56 = vpop.permute.xlu1 %693 }
 0x573   :  { %704 = vst.msk [vmem:[#allocation3 + $0x28] sm:$0xff] %vm281_vm1, %v694_v56 }
 0x574   :  { %v692_v57 = vpop.permute.xlu0 %691 }
 0x575   :  { %703 = vst.msk [vmem:[#allocation3 + $0x20] sm:$0xff] %vm281_vm1, %v692_v57  ;;  %3236 = vmatprep.mubr.msk.f32.mxu1 %vm281_vm1, %v692_v57 }
 0x576   :  { %v698_v59 = vpop.permute.xlu1 %697  ;;  %3237 = vmatmul.mubr.msk.f32.vlgmr.msra.gmra.mxu1 %vm281_vm1, %v694_v56 }
 0x577   :  { %706 = vst.msk [vmem:[#allocation3 + $0x38] sm:$0xff] %vm281_vm1, %v698_v59  ;;  %3243 = vmatpush3.msra.mxu1 %v3862_v1 }
 0x578   :  { %v696_v60 = vpop.permute.xlu0 %695  ;;  %3244 = vmatprep.subr.mxu1 %v3872_v4 }
 0x579   :  { %705 = vst.msk [vmem:[#allocation3 + $0x30] sm:$0xff] %vm281_vm1, %v696_v60  ;;  %3239 = vmatprep.mubr.msk.f32.mxu1 %vm281_vm1, %v696_v60  ;;  %3245 = vmatpush3.msra.mxu1 %v3872_v4 }
 0x57a   :  { %3240 = vmatmul.mubr.msk.f32.gmra.mxu1 %vm281_vm1, %v698_v59  ;;  %3246 = vmatprep.subr.mxu1 %v3885_v7  ;;  %v1146_v1 = vld [vmem:[#allocation3 + $0x28] sm:$0xff] }
 0x57b   :  { %3247 = vmatpush3.msra.mxu1 %v3885_v7  ;;  %v228_v7 = vadd.f32 %v3190_v2, %v3922_v13 }
 0x57c   :  { %v1145_v61 = vld [vmem:[#allocation3 + $0x20] sm:$0xff]  ;;  %3248 = vmatprep.subr.mxu1 %v3896_v9 }
 0x57d   :  { %3270 = vmatprep.mubr.msk.f32.mxu0 %vm281_vm1, %v1145_v61  ;;  %3249 = vmatpush3.msra.mxu1 %v3896_v9 }
 0x57e   :  { %3271 = vmatmul.mubr.msk.f32.gmra.mxu0 %vm281_vm1, %v1146_v1  ;;  %v1148_v4 = vld [vmem:[#allocation3 + $0x38] sm:$0xff] }
 0x580   :  { %v1147_v62 = vld [vmem:[#allocation3 + $0x30] sm:$0xff] }
 0x581   :  { %3273 = vmatprep.mubr.msk.f32.mxu0 %vm281_vm1, %v1147_v62 }
 0x582   :  { %3274 = vmatmul.mubr.msk.f32.gmra.mxu0 %vm281_vm1, %v1148_v4 }
 0x636   :  { %v3238_v10 = vpop.f32.mrf.mxu1 }
 0x637   :  { %v805_v14 = vadd.f32 %v3238_v10, %v228_v7 }
 0x638   :  { %v785_v9 = vpop.f32.mrf.mxu1 }
 0x639   :  { %3471 = vtanh.f32 %v805_v14  ;;  %v804_v15 = vadd.f32 %v785_v9, %v223_v11  ;;  %v2942_v26 = vmul.f32 -1.442695, %v805_v14 }
 0x63a   :  { %v3241_v17 = vpop.f32.mrf.mxu1 }
 0x63b   :  { %v807_v19 = vadd.f32 %v3241_v17, %v238_v12  ;;  %3473 = vtanh.f32 %v804_v15  ;;  %v2941_v27 = vmul.f32 -1.442695, %v804_v15  ;;  %v4159_v15 = vld [vmem:[%s4784_s5 + $0x10] sm:$0xff]  ;;  %v4167_v17 = vld [vmem:[%s4784_s5 + $0x8] sm:$0xff] }
 0x63c   :  { %v795_v20 = vpop.f32.mrf.mxu1 }
 0x63d   :  { %v806_v21 = vadd.f32 %v795_v20, %v233_v18  ;;  %3475 = vtanh.f32 %v807_v19  ;;  %v2944_v28 = vmul.f32 -1.442695, %v807_v19  ;;  %v4176_v19 = vld [vmem:[%s4784_s5] sm:$0xff] }
 0x63f   :  { %3477 = vtanh.f32 %v806_v21  ;;  %v2943_v29 = vmul.f32 -1.442695, %v806_v21 }
 0x640   :  { %3479 = vpow2.f32 %v2942_v26 }
 0x641   :  { %3481 = vpow2.f32 %v2941_v27 }
 0x642   :  { %3483 = vpow2.f32 %v2944_v28 }
 0x643   :  { %3485 = vpow2.f32 %v2943_v29 }
 0x646   :  { %v3472_v22 = vpop.eup %3471 }
 0x647   :  { %846 = vrot.lane.b32.xlu1 %v3472_v22, %s3794_s18 }
 0x648   :  { %v3474_v23 = vpop.eup %3473 }
 0x649   :  { %844 = vrot.lane.b32.xlu0 %v3474_v23, %s3794_s18 }
 0x64a   :  { %v3476_v24 = vpop.eup %3475 }
 0x64b   :  { %850 = vrot.lane.b32.xlu1 %v3476_v24, %s3794_s18  ;;  %v3196_v24 = vpop.f32.mrf.mxu0 }
 0x64c   :  { %v3478_v25 = vpop.eup %3477  ;;  %v248_v28 = vadd.f32 %v3196_v24, %v3922_v13 }
 0x64d   :  { %848 = vrot.lane.b32.xlu0 %v3478_v25, %s3794_s18  ;;  %v3480_v30 = vpop.eup %3479  ;;  %v242_v25 = vpop.f32.mrf.mxu0 }
 0x64e   :  { %v3482_v31 = vpop.eup %3481  ;;  %v821_v32 = vadd.f32 1.0, %v3480_v30  ;;  %v243_v30 = vadd.f32 %v3922_v13, %v242_v25 }
 0x64f   :  { %v3484_v33 = vpop.eup %3483  ;;  %v820_v34 = vadd.f32 1.0, %v3482_v31  ;;  %v3199_v26 = vpop.f32.mrf.mxu0 }
 0x650   :  { %v3486_v35 = vpop.eup %3485  ;;  %3487 = vrcp.f32 %v821_v32  ;;  %v823_v36 = vadd.f32 1.0, %v3484_v33  ;;  %v258_v31 = vadd.f32 %v3199_v26, %v3922_v13 }
 0x651   :  { %3489 = vrcp.f32 %v820_v34  ;;  %v822_v37 = vadd.f32 1.0, %v3486_v35  ;;  %v4200_v27 = vpop.f32.mrf.mxu0 }
 0x652   :  { %3491 = vrcp.f32 %v823_v36  ;;  %v4212_v36 = vld [vmem:[%s4785_s6] ss:$0 sm:$0xff] }
 0x653   :  { %3493 = vrcp.f32 %v822_v37 }
 0x65d   :  { %v3488_v39 = vpop.eup %3487 }
 0x65e   :  { %v3490_v43 = vpop.eup %3489  ;;  %v837_v50 = vmul.f32 %v3488_v39, %v4069_v38 }
 0x65f   :  { %v3492_v58 = vpop.eup %3491  ;;  %v836_v53 = vmul.f32 %v3490_v43, %v4073_v41 }
 0x660   :  { %v3494_v48 = vpop.eup %3493  ;;  %v839_v56 = vmul.f32 %v3492_v58, %v4077_v44 }
 0x661   :  { %v838_v60 = vmul.f32 %v3494_v48, %v4081_v46  ;;  %v4146_v46 = vld [vmem:[%s4784_s5 + $0x18] sm:$0xff] }
 0x662   :  { %3288 = vmatprep.subr.mxu1 %v4146_v46 }
 0x6b9   :  { %v847_v40 = vpop.permute.xlu1 %846 }
 0x6ba   :  { %v857_v42 = vmul.f32 %v3488_v39, %v847_v40 }
 0x6bb   :  { %v845_v45 = vpop.permute.xlu0 %844 }
 0x6bc   :  { %866 = vrot.lane.b32.xlu1 %v857_v42, %s3795_s19  ;;  %v856_v63 = vmul.f32 %v3490_v43, %v845_v45 }
 0x6bd   :  { %v851_v47 = vpop.permute.xlu1 %850 }
 0x6be   :  { %v859_v6 = vmul.f32 %v3492_v58, %v851_v47  ;;  %864 = vrot.lane.b32.xlu0 %v856_v63, %s3795_s19 }
 0x6bf   :  { %v849_v0 = vpop.permute.xlu0 %848 }
 0x6c0   :  { %v858_v49 = vmul.f32 %v3494_v48, %v849_v0  ;;  %870 = vrot.lane.b32.xlu1 %v859_v6, %s3795_s19 }
 0x6c2   :  { %868 = vrot.lane.b32.xlu0 %v858_v49, %s3795_s19 }
 0x72e   :  { %v867_v51 = vpop.permute.xlu1 %866 }
 0x72f   :  { %v4124_v52 = vadd.f32 %v867_v51, %v837_v50 }
 0x730   :  { %v865_v54 = vpop.permute.xlu0 %864 }
 0x731   :  { %3495 = vtanh.f32 %v4124_v52  ;;  %v4128_v55 = vadd.f32 %v865_v54, %v836_v53 }
 0x732   :  { %v871_v57 = vpop.permute.xlu1 %870 }
 0x733   :  { %3497 = vtanh.f32 %v4128_v55  ;;  %v4132_v59 = vadd.f32 %v871_v57, %v839_v56 }
 0x734   :  { %v869_v38 = vpop.permute.xlu0 %868 }
 0x735   :  { %3499 = vtanh.f32 %v4132_v59  ;;  %v4136_v61 = vadd.f32 %v869_v38, %v838_v60 }
 0x737   :  { %3501 = vtanh.f32 %v4136_v61 }
 0x73e   :  { %v3496_v41 = vpop.eup %3495 }
 0x73f   :  { %890 = vrot.lane.b32.xlu1 %v3496_v41, %s3794_s18 }
 0x740   :  { %v3498_v1 = vpop.eup %3497 }
 0x741   :  { %888 = vrot.lane.b32.xlu0 %v3498_v1, %s3794_s18 }
 0x742   :  { %v3500_v44 = vpop.eup %3499 }
 0x743   :  { %894 = vrot.lane.b32.xlu1 %v3500_v44, %s3794_s18 }
 0x744   :  { %v3502_v62 = vpop.eup %3501 }
 0x745   :  { %892 = vrot.lane.b32.xlu0 %v3502_v62, %s3794_s18 }
 0x7b1   :  { %v891_v4 = vpop.permute.xlu1 %890 }
 0x7b2   :  { %v901_v2 = vmul.f32 %v3488_v39, %v891_v4 }
 0x7b3   :  { %v889_v5 = vpop.permute.xlu0 %888 }
 0x7b4   :  { %910 = vrot.lane.b32.xlu1 %v901_v2, %s3795_s19  ;;  %v900_v7 = vmul.f32 %v3490_v43, %v889_v5 }
 0x7b5   :  { %v895_v8 = vpop.permute.xlu1 %894 }
 0x7b6   :  { %v903_v10 = vmul.f32 %v3492_v58, %v895_v8  ;;  %908 = vrot.lane.b32.xlu0 %v900_v7, %s3795_s19 }
 0x7b7   :  { %v893_v11 = vpop.permute.xlu0 %892 }
 0x7b8   :  { %v902_v12 = vmul.f32 %v3494_v48, %v893_v11  ;;  %914 = vrot.lane.b32.xlu1 %v903_v10, %s3795_s19 }
 0x7ba   :  { %912 = vrot.lane.b32.xlu0 %v902_v12, %s3795_s19 }
 0x826   :  { %v911_v14 = vpop.permute.xlu1 %910 }
 0x827   :  { %921 = vst.msk [vmem:[#allocation3 + $0x48] sm:$0xff] %vm281_vm1, %v911_v14 }
 0x828   :  { %v909_v9 = vpop.permute.xlu0 %908 }
 0x829   :  { %920 = vst.msk [vmem:[#allocation3 + $0x40] sm:$0xff] %vm281_vm1, %v909_v9  ;;  %3250 = vmatprep.mubr.msk.f32.mxu1 %vm281_vm1, %v909_v9 }
 0x82a   :  { %v915_v16 = vpop.permute.xlu1 %914  ;;  %3251 = vmatmul.mubr.msk.f32.vlgmr.msra.gmra.mxu1 %vm281_vm1, %v911_v14 }
 0x82b   :  { %923 = vst.msk [vmem:[#allocation3 + $0x58] sm:$0xff] %vm281_vm1, %v915_v16  ;;  %3289 = vmatpush3.msra.mxu1 %v4146_v46 }
 0x82c   :  { %3290 = vmatprep.subr.mxu1 %v4159_v15  ;;  %v913_v18 = vpop.permute.xlu0 %912 }
 0x82d   :  { %3291 = vmatpush3.msra.mxu1 %v4159_v15  ;;  %922 = vst.msk [vmem:[#allocation3 + $0x50] sm:$0xff] %vm281_vm1, %v913_v18  ;;  %3253 = vmatprep.mubr.msk.f32.mxu1 %vm281_vm1, %v913_v18 }
 0x82e   :  { %3292 = vmatprep.subr.mxu1 %v4167_v17  ;;  %3254 = vmatmul.mubr.msk.f32.gmra.mxu1 %vm281_vm1, %v915_v16  ;;  %v1150_v21 = vld [vmem:[#allocation3 + $0x48] sm:$0xff] }
 0x82f   :  { %3293 = vmatpush3.msra.mxu1 %v4167_v17  ;;  %3296 = vmatprep.mubr.f32.mxu1 %v3793_v3 }
 0x830   :  { %3294 = vmatprep.subr.mxu1 %v4176_v19  ;;  %v1149_v20 = vld [vmem:[#allocation3 + $0x40] sm:$0xff] }
 0x831   :  { %3295 = vmatpush3.msra.mxu1 %v4176_v19  ;;  %3276 = vmatprep.mubr.msk.f32.mxu0 %vm281_vm1, %v1149_v20 }
 0x832   :  { %3277 = vmatmul.mubr.msk.f32.gmra.mxu0 %vm281_vm1, %v1150_v21  ;;  %3297 = vmatmul.mubr.f32.vlgmr.msra.gmra.mxu1 %v3793_v3  ;;  %v1152_v23 = vld [vmem:[#allocation3 + $0x58] sm:$0xff] }
 0x833   :  { %3299 = vmatprep.mubr.f32.mxu1 %v3793_v3  ;;  %3302 = vmatprep.subr.mxu1 %v4146_v46 }
 0x834   :  { %v1151_v22 = vld [vmem:[#allocation3 + $0x50] sm:$0xff]  ;;  %3303 = vmatpush3.msra.mxu1 %v4146_v46 }
 0x835   :  { %3279 = vmatprep.mubr.msk.f32.mxu0 %vm281_vm1, %v1151_v22  ;;  %3304 = vmatprep.subr.mxu1 %v4159_v15 }
 0x836   :  { %3280 = vmatmul.mubr.msk.f32.gmra.mxu0 %vm281_vm1, %v1152_v23  ;;  %3300 = vmatmul.mubr.f32.gmra.mxu1 %v3793_v3  ;;  %v3266_v3 = vpop.f32.mrf.mxu0 }
 0x837   :  { %3305 = vmatpush3.msra.mxu1 %v4159_v15  ;;  %v1292_v43 = vadd.f32 %v3266_v3, %v4212_v36 }
 0x838   :  { %3306 = vmatprep.subr.mxu1 %v4167_v17  ;;  %v1286_v33 = vpop.f32.mrf.mxu0 }
 0x839   :  { %3307 = vmatpush3.msra.mxu1 %v4167_v17  ;;  %v1287_v45 = vadd.f32 %v4212_v36, %v1286_v33 }
 0x83a   :  { %3308 = vmatprep.subr.mxu1 %v4176_v19  ;;  %v3269_v40 = vpop.f32.mrf.mxu0 }
 0x83b   :  { %3309 = vmatpush3.msra.mxu1 %v4176_v19  ;;  %v1302_v6 = vadd.f32 %v3269_v40, %v4212_v36 }
 0x83c   :  { %3316 = vmatprep.subr.mxu1 %v4146_v46  ;;  %v1296_v58 = vpop.f32.mrf.mxu0 }
 0x83d   :  { %v1297_v49 = vadd.f32 %v4212_v36, %v1296_v58 }
 0x8ea   :  { %v3252_v29 = vpop.f32.mrf.mxu1 }
 0x8eb   :  { %v4205_v32 = vadd.f32 %v3252_v29, %v248_v28 }
 0x8ec   :  { %v1002_v34 = vpop.f32.mrf.mxu1 }
 0x8ed   :  { %v4207_v35 = vadd.f32 %v1002_v34, %v243_v30 }
 0x8ee   :  { %v3255_v37 = vpop.f32.mrf.mxu1 }
 0x8ef   :  { %v4214_v39 = vadd.f32 %v3255_v37, %v258_v31 }
 0x8f0   :  { %v4216_v42 = vpop.f32.mrf.mxu1 }
 0x8f2   :  { %v3298_v13 = vpop.f32.mrf.mxu1 }
 0x8f3   :  { %v1471_v63 = vadd.f32 %v3298_v13, %v1292_v43 }
 0x8f4   :  { %v1451_v47 = vpop.f32.mrf.mxu1 }
 0x8f5   :  { %v1470_v48 = vadd.f32 %v1451_v47, %v1287_v45  ;;  %3503 = vtanh.f32 %v1471_v63  ;;  %v2971_v38 = vmul.f32 -1.442695, %v1471_v63 }
 0x8f6   :  { %v3301_v0 = vpop.f32.mrf.mxu1 }
 0x8f7   :  { %v1473_v50 = vadd.f32 %v3301_v0, %v1302_v6  ;;  %3505 = vtanh.f32 %v1470_v48  ;;  %v2970_v41 = vmul.f32 -1.442695, %v1470_v48 }
 0x8f8   :  { %v1461_v51 = vpop.f32.mrf.mxu1 }
 0x8f9   :  { %v1472_v53 = vadd.f32 %v1461_v51, %v1297_v49  ;;  %3507 = vtanh.f32 %v1473_v50  ;;  %v2973_v1 = vmul.f32 -1.442695, %v1473_v50 }
 0x8fb   :  { %3509 = vtanh.f32 %v1472_v53  ;;  %v2972_v44 = vmul.f32 -1.442695, %v1472_v53 }
 0x8fc   :  { %3511 = vpow2.f32 %v2971_v38 }
 0x8fd   :  { %3513 = vpow2.f32 %v2970_v41 }
 0x8fe   :  { %3515 = vpow2.f32 %v2973_v1  ;;  %v3272_v1 = vpop.f32.mrf.mxu0 }
 0x8ff   :  { %3517 = vpow2.f32 %v2972_v44 }
 0x900   :  { %v1306_v44 = vpop.f32.mrf.mxu0 }
 0x902   :  { %v3504_v54 = vpop.eup %3503 }
 0x903   :  { %1512 = vrot.lane.b32.xlu1 %v3504_v54, %s3794_s18 }
 0x904   :  { %v3506_v56 = vpop.eup %3505 }
 0x905   :  { %1510 = vrot.lane.b32.xlu0 %v3506_v56, %s3794_s18 }
 0x906   :  { %v3508_v57 = vpop.eup %3507 }
 0x907   :  { %1516 = vrot.lane.b32.xlu1 %v3508_v57, %s3794_s18 }
 0x908   :  { %v3510_v60 = vpop.eup %3509 }
 0x909   :  { %1514 = vrot.lane.b32.xlu0 %v3510_v60, %s3794_s18  ;;  %v3512_v62 = vpop.eup %3511 }
 0x90a   :  { %v3514_v4 = vpop.eup %3513  ;;  %v1487_v2 = vadd.f32 1.0, %v3512_v62  ;;  %v3275_v62 = vpop.f32.mrf.mxu0 }
 0x90b   :  { %v3516_v5 = vpop.eup %3515  ;;  %v1486_v7 = vadd.f32 1.0, %v3514_v4  ;;  %v1312_v4 = vadd.f32 %v3272_v1, %v4212_v36 }
 0x90c   :  { %v3518_v8 = vpop.eup %3517  ;;  %3519 = vrcp.f32 %v1487_v2  ;;  %v1489_v10 = vadd.f32 1.0, %v3516_v5  ;;  %v1307_v5 = vadd.f32 %v4212_v36, %v1306_v44 }
 0x90d   :  { %3521 = vrcp.f32 %v1486_v7  ;;  %v1488_v11 = vadd.f32 1.0, %v3518_v8  ;;  %v1316_v8 = vpop.f32.mrf.mxu0 }
 0x90e   :  { %3523 = vrcp.f32 %v1489_v10 }
 0x90f   :  { %3525 = vrcp.f32 %v1488_v11  ;;  %v1322_v11 = vadd.f32 %v3275_v62, %v4212_v36 }
 0x919   :  { %v3520_v12 = vpop.eup %3519 }
 0x91a   :  { %v3522_v16 = vpop.eup %3521  ;;  %v1503_v28 = vmul.f32 0.0, %v3520_v12 }
 0x91b   :  { %v3524_v21 = vpop.eup %3523  ;;  %v1502_v30 = vmul.f32 0.0, %v3522_v16 }
 0x91c   :  { %v3526_v24 = vpop.eup %3525  ;;  %v1505_v34 = vmul.f32 0.0, %v3524_v21 }
 0x91d   :  { %v1504_v43 = vmul.f32 0.0, %v3526_v24 }
 0x975   :  { %v1513_v14 = vpop.permute.xlu1 %1512 }
 0x976   :  { %v1523_v9 = vmul.f32 %v3520_v12, %v1513_v14 }
 0x977   :  { %v1511_v18 = vpop.permute.xlu0 %1510 }
 0x978   :  { %v1522_v20 = vmul.f32 %v3522_v16, %v1511_v18  ;;  %1532 = vrot.lane.b32.xlu1 %v1523_v9, %s3795_s19  ;;  %v1317_v9 = vadd.f32 %v4212_v36, %v1316_v8 }
 0x979   :  { %v1517_v22 = vpop.permute.xlu1 %1516 }
 0x97a   :  { %v1525_v23 = vmul.f32 %v3524_v21, %v1517_v22  ;;  %1530 = vrot.lane.b32.xlu0 %v1522_v20, %s3795_s19 }
 0x97b   :  { %v1515_v25 = vpop.permute.xlu0 %1514 }
 0x97c   :  { %v1524_v26 = vmul.f32 %v3526_v24, %v1515_v25  ;;  %1536 = vrot.lane.b32.xlu1 %v1525_v23, %s3795_s19 }
 0x97e   :  { %1534 = vrot.lane.b32.xlu0 %v1524_v26, %s3795_s19 }
 0x9ea   :  { %v1533_v3 = vpop.permute.xlu1 %1532 }
 0x9eb   :  { %v4230_v29 = vadd.f32 %v1533_v3, %v1503_v28 }
 0x9ec   :  { %v1531_v31 = vpop.permute.xlu0 %1530 }
 0x9ed   :  { %3527 = vtanh.f32 %v4230_v29  ;;  %v4233_v33 = vadd.f32 %v1531_v31, %v1502_v30 }
 0x9ee   :  { %v1537_v37 = vpop.permute.xlu1 %1536 }
 0x9ef   :  { %3529 = vtanh.f32 %v4233_v33  ;;  %v4236_v40 = vadd.f32 %v1537_v37, %v1505_v34 }
 0x9f0   :  { %v1535_v13 = vpop.permute.xlu0 %1534 }
 0x9f1   :  { %3531 = vtanh.f32 %v4236_v40  ;;  %v4239_v45 = vadd.f32 %v1535_v13, %v1504_v43 }
 0x9f3   :  { %3533 = vtanh.f32 %v4239_v45 }
 0x9fa   :  { %v3528_v63 = vpop.eup %3527 }
 0x9fb   :  { %1556 = vrot.lane.b32.xlu1 %v3528_v63, %s3794_s18 }
 0x9fc   :  { %v3530_v58 = vpop.eup %3529 }
 0x9fd   :  { %1554 = vrot.lane.b32.xlu0 %v3530_v58, %s3794_s18 }
 0x9fe   :  { %v3532_v47 = vpop.eup %3531 }
 0x9ff   :  { %1560 = vrot.lane.b32.xlu1 %v3532_v47, %s3794_s18 }
 0xa00   :  { %v3534_v6 = vpop.eup %3533 }
 0xa01   :  { %1558 = vrot.lane.b32.xlu0 %v3534_v6, %s3794_s18 }
 0xa6d   :  { %v1557_v48 = vpop.permute.xlu1 %1556 }
 0xa6e   :  { %v1567_v0 = vmul.f32 %v3520_v12, %v1557_v48 }
 0xa6f   :  { %v1555_v49 = vpop.permute.xlu0 %1554 }
 0xa70   :  { %v1566_v50 = vmul.f32 %v3522_v16, %v1555_v49  ;;  %1576 = vrot.lane.b32.xlu1 %v1567_v0, %s3795_s19 }
 0xa71   :  { %v1561_v51 = vpop.permute.xlu1 %1560 }
 0xa72   :  { %v1569_v53 = vmul.f32 %v3524_v21, %v1561_v51  ;;  %1574 = vrot.lane.b32.xlu0 %v1566_v50, %s3795_s19 }
 0xa73   :  { %v1559_v54 = vpop.permute.xlu0 %1558 }
 0xa74   :  { %v1568_v56 = vmul.f32 %v3526_v24, %v1559_v54  ;;  %1580 = vrot.lane.b32.xlu1 %v1569_v53, %s3795_s19 }
 0xa76   :  { %1578 = vrot.lane.b32.xlu0 %v1568_v56, %s3795_s19 }
 0xae2   :  { %v1577_v57 = vpop.permute.xlu1 %1576 }
 0xae3   :  { %1587 = vst.msk [vmem:[#allocation3 + $0x8] sm:$0xff] %vm281_vm1, %v1577_v57 }
 0xae4   :  { %v1575_v60 = vpop.permute.xlu0 %1574 }
 0xae5   :  { %1586 = vst.msk [vmem:[#allocation3] sm:$0xff] %vm281_vm1, %v1575_v60  ;;  %3310 = vmatprep.mubr.msk.f32.mxu1 %vm281_vm1, %v1575_v60 }
 0xae6   :  { %v1581_v38 = vpop.permute.xlu1 %1580  ;;  %3311 = vmatmul.mubr.msk.f32.vlgmr.msra.gmra.mxu1 %vm281_vm1, %v1577_v57 }
 0xae7   :  { %1589 = vst.msk [vmem:[#allocation3 + $0x18] sm:$0xff] %vm281_vm1, %v1581_v38  ;;  %3317 = vmatpush3.msra.mxu1 %v4146_v46 }
 0xae8   :  { %v1579_v41 = vpop.permute.xlu0 %1578  ;;  %3318 = vmatprep.subr.mxu1 %v4159_v15 }
 0xae9   :  { %1588 = vst.msk [vmem:[#allocation3 + $0x10] sm:$0xff] %vm281_vm1, %v1579_v41  ;;  %3313 = vmatprep.mubr.msk.f32.mxu1 %vm281_vm1, %v1579_v41  ;;  %3319 = vmatpush3.msra.mxu1 %v4159_v15 }
 0xaea   :  { %3314 = vmatmul.mubr.msk.f32.gmra.mxu1 %vm281_vm1, %v1581_v38  ;;  %3320 = vmatprep.subr.mxu1 %v4167_v17 }
 0xaeb   :  { %3321 = vmatpush3.msra.mxu1 %v4167_v17 }
 0xaec   :  { %3322 = vmatprep.subr.mxu1 %v4176_v19 }
 0xaed   :  { %3323 = vmatpush3.msra.mxu1 %v4176_v19 }
 0xaee   :  { %3330 = vmatprep.subr.mxu1 %v4146_v46 }
 0xba6   :  { %v3312_v2 = vpop.f32.mrf.mxu1 }
 0xba7   :  { %v1688_v7 = vadd.f32 %v3312_v2, %v1312_v4 }
 0xba8   :  { %v1668_v10 = vpop.f32.mrf.mxu1 }
 0xba9   :  { %3535 = vtanh.f32 %v1688_v7  ;;  %v1687_v12 = vadd.f32 %v1668_v10, %v1307_v5  ;;  %v2979_v25 = vmul.f32 -1.442695, %v1688_v7 }
 0xbaa   :  { %v3315_v14 = vpop.f32.mrf.mxu1 }
 0xbab   :  { %v1690_v16 = vadd.f32 %v3315_v14, %v1322_v11  ;;  %3537 = vtanh.f32 %v1687_v12  ;;  %v2978_v26 = vmul.f32 -1.442695, %v1687_v12 }
 0xbac   :  { %v1678_v18 = vpop.f32.mrf.mxu1 }
 0xbad   :  { %v1689_v20 = vadd.f32 %v1678_v18, %v1317_v9  ;;  %3539 = vtanh.f32 %v1690_v16  ;;  %v2981_v28 = vmul.f32 -1.442695, %v1690_v16 }
 0xbaf   :  { %3541 = vtanh.f32 %v1689_v20  ;;  %v2980_v3 = vmul.f32 -1.442695, %v1689_v20 }
 0xbb0   :  { %3543 = vpow2.f32 %v2979_v25 }
 0xbb1   :  { %3545 = vpow2.f32 %v2978_v26 }
 0xbb2   :  { %3547 = vpow2.f32 %v2981_v28 }
 0xbb3   :  { %3549 = vpow2.f32 %v2980_v3 }
 0xbb6   :  { %v3536_v21 = vpop.eup %3535 }
 0xbb7   :  { %1729 = vrot.lane.b32.xlu1 %v3536_v21, %s3794_s18 }
 0xbb8   :  { %v3538_v22 = vpop.eup %3537 }
 0xbb9   :  { %1727 = vrot.lane.b32.xlu0 %v3538_v22, %s3794_s18 }
 0xbba   :  { %v3540_v23 = vpop.eup %3539 }
 0xbbb   :  { %1733 = vrot.lane.b32.xlu1 %v3540_v23, %s3794_s18 }
 0xbbc   :  { %v3542_v24 = vpop.eup %3541 }
 0xbbd   :  { %1731 = vrot.lane.b32.xlu0 %v3542_v24, %s3794_s18  ;;  %v3544_v30 = vpop.eup %3543 }
 0xbbe   :  { %v3546_v31 = vpop.eup %3545  ;;  %v1704_v34 = vadd.f32 1.0, %v3544_v30 }
 0xbbf   :  { %v3548_v37 = vpop.eup %3547  ;;  %v1703_v43 = vadd.f32 1.0, %v3546_v31 }
 0xbc0   :  { %v3550_v13 = vpop.eup %3549  ;;  %3551 = vrcp.f32 %v1704_v34  ;;  %v1706_v63 = vadd.f32 1.0, %v3548_v37  ;;  %v2949_v37 = vmul.f32 -1.442695, %v4207_v35 }
 0xbc1   :  { %3553 = vrcp.f32 %v1703_v43  ;;  %v1705_v58 = vadd.f32 1.0, %v3550_v13  ;;  %v2952_v43 = vmul.f32 -1.442695, %v4214_v39  ;;  %v3278_v13 = vpop.f32.mrf.mxu0 }
 0xbc2   :  { %3555 = vrcp.f32 %v1706_v63 }
 0xbc3   :  { %3557 = vrcp.f32 %v1705_v58  ;;  %v1326_v63 = vpop.f32.mrf.mxu0 }
 0xbc5   :  { %v3281_v58 = vpop.f32.mrf.mxu0 }
 0xbcd   :  { %v3552_v47 = vpop.eup %3551 }
 0xbce   :  { %v3554_v0 = vpop.eup %3553  ;;  %v1720_v38 = vmul.f32 %v3552_v47, %v4230_v29 }
 0xbcf   :  { %v3556_v51 = vpop.eup %3555  ;;  %v1719_v44 = vmul.f32 %v3554_v0, %v4233_v33 }
 0xbd0   :  { %v3558_v56 = vpop.eup %3557  ;;  %v1722_v2 = vmul.f32 %v3556_v51, %v4236_v40 }
 0xbd1   :  { %v1721_v8 = vmul.f32 %v3558_v56, %v4239_v45  ;;  %v3791_v45 = vld [vmem:[%s4782_s3] ss:$0 sm:$0xff] }
 0xbd2   :  { %v253_v14 = vadd.f32 %v3791_v45, %v4200_v27 }
 0xbd4   :  { %v1023_v9 = vadd.f32 %v4216_v42, %v253_v14 }
 0xc29   :  { %v1730_v6 = vpop.permute.xlu1 %1729 }
 0xc2a   :  { %v1740_v48 = vmul.f32 %v3552_v47, %v1730_v6  ;;  %v1327_v6 = vadd.f32 %v4212_v36, %v1326_v63 }
 0xc2b   :  { %v1728_v49 = vpop.permute.xlu0 %1727 }
 0xc2c   :  { %1749 = vrot.lane.b32.xlu1 %v1740_v48, %s3795_s19  ;;  %v1739_v50 = vmul.f32 %v3554_v0, %v1728_v49 }
 0xc2d   :  { %v1734_v53 = vpop.permute.xlu1 %1733 }
 0xc2e   :  { %v1742_v54 = vmul.f32 %v3556_v51, %v1734_v53  ;;  %1747 = vrot.lane.b32.xlu0 %v1739_v50, %s3795_s19 }
 0xc2f   :  { %v1732_v57 = vpop.permute.xlu0 %1731 }
 0xc30   :  { %v1741_v60 = vmul.f32 %v3558_v56, %v1732_v57  ;;  %1753 = vrot.lane.b32.xlu1 %v1742_v54, %s3795_s19 }
 0xc32   :  { %1751 = vrot.lane.b32.xlu0 %v1741_v60, %s3795_s19 }
 0xc9e   :  { %v1750_v41 = vpop.permute.xlu1 %1749 }
 0xc9f   :  { %v4279_v1 = vadd.f32 %v1750_v41, %v1720_v38 }
 0xca0   :  { %v1748_v62 = vpop.permute.xlu0 %1747 }
 0xca1   :  { %3559 = vtanh.f32 %v4279_v1  ;;  %v4283_v4 = vadd.f32 %v1748_v62, %v1719_v44 }
 0xca2   :  { %v1754_v5 = vpop.permute.xlu1 %1753 }
 0xca3   :  { %3561 = vtanh.f32 %v4283_v4  ;;  %v4287_v7 = vadd.f32 %v1754_v5, %v1722_v2 }
 0xca4   :  { %v1752_v29 = vpop.permute.xlu0 %1751 }
 0xca5   :  { %3563 = vtanh.f32 %v4287_v7  ;;  %v4291_v10 = vadd.f32 %v1752_v29, %v1721_v8 }
 0xca7   :  { %3565 = vtanh.f32 %v4291_v10 }
 0xca8   :  { %3567 = vtanh.f32 %v4205_v32 }
 0xca9   :  { %3569 = vtanh.f32 %v4207_v35  ;;  %v1342_v35 = vadd.f32 %v3281_v58, %v4212_v36 }
 0xcaa   :  { %3571 = vtanh.f32 %v4214_v39 }
 0xcab   :  { %3573 = vtanh.f32 %v1023_v9 }
 0xcae   :  { %v3560_v33 = vpop.eup %3559 }
 0xcaf   :  { %1773 = vrot.lane.b32.xlu1 %v3560_v33, %s3794_s18 }
 0xcb0   :  { %v3562_v11 = vpop.eup %3561 }
 0xcb1   :  { %1771 = vrot.lane.b32.xlu0 %v3562_v11, %s3794_s18 }
 0xcb2   :  { %v3564_v40 = vpop.eup %3563 }
 0xcb3   :  { %1777 = vrot.lane.b32.xlu1 %v3564_v40, %s3794_s18 }
 0xcb4   :  { %v3566_v12 = vpop.eup %3565 }
 0xcb5   :  { %1775 = vrot.lane.b32.xlu0 %v3566_v12, %s3794_s18  ;;  %v3568_v42 = vpop.eup %3567 }
 0xcb6   :  { %v3570_v25 = vpop.eup %3569 }
 0xcb7   :  { %v3572_v26 = vpop.eup %3571 }
 0xcb8   :  { %v3574_v28 = vpop.eup %3573 }
 0xd21   :  { %v1774_v16 = vpop.permute.xlu1 %1773 }
 0xd22   :  { %v1784_v18 = vmul.f32 %v3552_v47, %v1774_v16 }
 0xd23   :  { %v1772_v20 = vpop.permute.xlu0 %1771 }
 0xd24   :  { %1793 = vrot.lane.b32.xlu1 %v1784_v18, %s3795_s19  ;;  %v1783_v21 = vmul.f32 %v3554_v0, %v1772_v20 }
 0xd25   :  { %v1778_v22 = vpop.permute.xlu1 %1777 }
 0xd26   :  { %v1786_v23 = vmul.f32 %v3556_v51, %v1778_v22  ;;  %1791 = vrot.lane.b32.xlu0 %v1783_v21, %s3795_s19 }
 0xd27   :  { %v1776_v27 = vpop.permute.xlu0 %1775 }
 0xd28   :  { %v1785_v24 = vmul.f32 %v3558_v56, %v1776_v27  ;;  %1797 = vrot.lane.b32.xlu1 %v1786_v23, %s3795_s19 }
 0xd2a   :  { %1795 = vrot.lane.b32.xlu0 %v1785_v24, %s3795_s19 }
 0xd2c   :  { %1063 = vrot.lane.b32.xlu1 %v3568_v42, %s3794_s18 }
 0xd2e   :  { %1061 = vrot.lane.b32.xlu0 %v3570_v25, %s3794_s18 }
 0xd30   :  { %1067 = vrot.lane.b32.xlu1 %v3572_v26, %s3794_s18 }
 0xd32   :  { %1065 = vrot.lane.b32.xlu0 %v3574_v28, %s3794_s18 }
 0xd96   :  { %v1794_v3 = vpop.permute.xlu1 %1793 }
 0xd97   :  { %1804 = vst.msk [vmem:[#allocation3 + $0x28] sm:$0xff] %vm281_vm1, %v1794_v3 }
 0xd98   :  { %v1792_v30 = vpop.permute.xlu0 %1791 }
 0xd99   :  { %1803 = vst.msk [vmem:[#allocation3 + $0x20] sm:$0xff] %vm281_vm1, %v1792_v30  ;;  %3324 = vmatprep.mubr.msk.f32.mxu1 %vm281_vm1, %v1792_v30 }
 0xd9a   :  { %v1798_v31 = vpop.permute.xlu1 %1797  ;;  %3325 = vmatmul.mubr.msk.f32.vlgmr.msra.gmra.mxu1 %vm281_vm1, %v1794_v3 }
 0xd9b   :  { %1806 = vst.msk [vmem:[#allocation3 + $0x38] sm:$0xff] %vm281_vm1, %v1798_v31  ;;  %3331 = vmatpush3.msra.mxu1 %v4146_v46  ;;  %v2950_v46 = vmul.f32 -1.442695, %v4205_v32  ;;  %v1336_v32 = vpop.f32.mrf.mxu0 }
 0xd9c   :  { %v1796_v34 = vpop.permute.xlu0 %1795  ;;  %3332 = vmatprep.subr.mxu1 %v4159_v15  ;;  %v1337_v53 = vadd.f32 %v4212_v36, %v1336_v32 }
 0xd9d   :  { %1805 = vst.msk [vmem:[#allocation3 + $0x30] sm:$0xff] %vm281_vm1, %v1796_v34  ;;  %3327 = vmatprep.mubr.msk.f32.mxu1 %vm281_vm1, %v1796_v34  ;;  %3333 = vmatpush3.msra.mxu1 %v4159_v15  ;;  %3575 = vpow2.f32 %v2950_v46  ;;  %v2951_v15 = vmul.f32 -1.442695, %v1023_v9 }
 0xd9e   :  { %3328 = vmatmul.mubr.msk.f32.gmra.mxu1 %vm281_vm1, %v1798_v31  ;;  %3334 = vmatprep.subr.mxu1 %v4167_v17  ;;  %3577 = vpow2.f32 %v2949_v37 }
 0xd9f   :  { %3335 = vmatpush3.msra.mxu1 %v4167_v17  ;;  %3579 = vpow2.f32 %v2952_v43  ;;  %v1332_v17 = vadd.f32 %v3278_v13, %v4212_v36  ;;  %v1064_v36 = vpop.permute.xlu1 %1063 }
 0xda0   :  { %3336 = vmatprep.subr.mxu1 %v4176_v19  ;;  %3581 = vpow2.f32 %v2951_v15  ;;  %v1062_v29 = vpop.permute.xlu0 %1061 }
 0xda1   :  { %3337 = vmatpush3.msra.mxu1 %v4176_v19 }
 0xda3   :  { %v1068_v45 = vpop.permute.xlu1 %1067 }
 0xda4   :  { %v1066_v16 = vpop.permute.xlu0 %1065 }
 0xdaa   :  { %v3576_v48 = vpop.eup %3575 }
 0xdab   :  { %v3578_v50 = vpop.eup %3577  ;;  %v1038_v51 = vadd.f32 1.0, %v3576_v48 }
 0xdac   :  { %v3580_v57 = vpop.eup %3579  ;;  %v1037_v38 = vadd.f32 1.0, %v3578_v50 }
 0xdad   :  { %v3582_v41 = vpop.eup %3581  ;;  %v1040_v44 = vadd.f32 1.0, %v3580_v57 }
 0xdae   :  { %v1039_v62 = vadd.f32 1.0, %v3582_v41 }
 0xe5a   :  { %v3326_v47 = vpop.f32.mrf.mxu1 }
 0xe5b   :  { %v1905_v19 = vadd.f32 %v3326_v47, %v1332_v17 }
 0xe5c   :  { %v1885_v0 = vpop.f32.mrf.mxu1 }
 0xe5d   :  { %3583 = vtanh.f32 %v1905_v19  ;;  %v1904_v39 = vadd.f32 %v1885_v0, %v1327_v6  ;;  %v2987_v22 = vmul.f32 -1.442695, %v1905_v19 }
 0xe5e   :  { %v3329_v49 = vpop.f32.mrf.mxu1 }
 0xe5f   :  { %v1907_v54 = vadd.f32 %v3329_v49, %v1342_v35  ;;  %3585 = vtanh.f32 %v1904_v39  ;;  %v2986_v23 = vmul.f32 -1.442695, %v1904_v39 }
 0xe60   :  { %v1895_v56 = vpop.f32.mrf.mxu1 }
 0xe61   :  { %v1906_v60 = vadd.f32 %v1895_v56, %v1337_v53  ;;  %3587 = vtanh.f32 %v1907_v54  ;;  %v2989_v27 = vmul.f32 -1.442695, %v1907_v54 }
 0xe62   :  { %3589 = vrcp.f32 %v1038_v51 }
 0xe63   :  { %3591 = vtanh.f32 %v1906_v60  ;;  %v2988_v24 = vmul.f32 -1.442695, %v1906_v60 }
 0xe64   :  { %3593 = vrcp.f32 %v1037_v38 }
 0xe65   :  { %3595 = vrcp.f32 %v1040_v44 }
 0xe66   :  { %3597 = vrcp.f32 %v1039_v62 }
 0xe67   :  { %3599 = vpow2.f32 %v2987_v22 }
 0xe68   :  { %3601 = vpow2.f32 %v2986_v23 }
 0xe69   :  { %3603 = vpow2.f32 %v2989_v27 }
 0xe6a   :  { %v3584_v2 = vpop.eup %3583  ;;  %3605 = vpow2.f32 %v2988_v24 }
 0xe6b   :  { %1946 = vrot.lane.b32.xlu1 %v3584_v2, %s3794_s18 }
 0xe6c   :  { %v3586_v5 = vpop.eup %3585 }
 0xe6d   :  { %1944 = vrot.lane.b32.xlu0 %v3586_v5, %s3794_s18 }
 0xe6e   :  { %v3588_v8 = vpop.eup %3587 }
 0xe6f   :  { %v4338_v33 = vpop.eup %3589  ;;  %1950 = vrot.lane.b32.xlu1 %v3588_v8, %s3794_s18 }
 0xe70   :  { %v3592_v11 = vpop.eup %3591  ;;  %v1074_v40 = vmul.f32 %v4338_v33, %v1064_v36  ;;  %v1054_v32 = vmul.f32 %v4338_v33, %v4124_v52 }
 0xe71   :  { %1948 = vrot.lane.b32.xlu0 %v3592_v11, %s3794_s18  ;;  %v4343_v12 = vpop.eup %3593 }
 0xe72   :  { %v1073_v14 = vmul.f32 %v4343_v12, %v1062_v29  ;;  %v4347_v9 = vpop.eup %3595  ;;  %v1053_v39 = vmul.f32 %v4343_v12, %v4128_v55 }
 0xe73   :  { %1083 = vrot.lane.b32.xlu1 %v1074_v40, %s3795_s19  ;;  %v1076_v18 = vmul.f32 %v4347_v9, %v1068_v45  ;;  %v4351_v20 = vpop.eup %3597  ;;  %v1056_v51 = vmul.f32 %v4347_v9, %v4132_v59 }
 0xe74   :  { %v1075_v21 = vmul.f32 %v4351_v20, %v1066_v16  ;;  %v3600_v42 = vpop.eup %3599  ;;  %v1055_v56 = vmul.f32 %v4351_v20, %v4136_v61 }
 0xe75   :  { %1081 = vrot.lane.b32.xlu0 %v1073_v14, %s3795_s19  ;;  %v3602_v25 = vpop.eup %3601  ;;  %v1921_v26 = vadd.f32 1.0, %v3600_v42 }
 0xe76   :  { %v3604_v28 = vpop.eup %3603  ;;  %v1920_v3 = vadd.f32 1.0, %v3602_v25 }
 0xe77   :  { %1087 = vrot.lane.b32.xlu1 %v1076_v18, %s3795_s19  ;;  %v3606_v30 = vpop.eup %3605  ;;  %3607 = vrcp.f32 %v1921_v26  ;;  %v1923_v31 = vadd.f32 1.0, %v3604_v28 }
 0xe78   :  { %3609 = vrcp.f32 %v1920_v3  ;;  %v1922_v34 = vadd.f32 1.0, %v3606_v30 }
 0xe79   :  { %1085 = vrot.lane.b32.xlu0 %v1075_v21, %s3795_s19  ;;  %3611 = vrcp.f32 %v1923_v31  ;;  %v2259_v21 = vld [vmem:[%s4786_s7 + $0x10] sm:$0xff] }
 0xe7a   :  { %3613 = vrcp.f32 %v1922_v34 }
 0xe84   :  { %v4356_v46 = vpop.eup %3607 }
 0xe85   :  { %v4359_v13 = vpop.eup %3609  ;;  %v1937_v41 = vmul.f32 %v4356_v46, %v4279_v1 }
 0xe86   :  { %v4363_v58 = vpop.eup %3611  ;;  %v1936_v62 = vmul.f32 %v4359_v13, %v4283_v4 }
 0xe87   :  { %v4367_v6 = vpop.eup %3613  ;;  %v1939_v36 = vmul.f32 %v4363_v58, %v4287_v7 }
 0xe88   :  { %v1938_v1 = vmul.f32 %v4367_v6, %v4291_v10  ;;  %v2260_v10 = vld [vmem:[%s4786_s7 + $0x18] sm:$0xff] }
 0xe89   :  { %3344 = vmatprep.subr.mxu0 %v2260_v10 }
 0xe8a   :  { %3345 = vmatpush3.msra.mxu0 %v2260_v10 }
 0xe8b   :  { %3346 = vmatprep.subr.mxu0 %v2259_v21 }
 0xe8c   :  { %3347 = vmatpush3.msra.mxu0 %v2259_v21 }
 0xedd   :  { %v1947_v37 = vpop.permute.xlu1 %1946 }
 0xede   :  { %v1957_v43 = vmul.f32 %v4356_v46, %v1947_v37 }
 0xedf   :  { %v1945_v15 = vpop.permute.xlu0 %1944 }
 0xee0   :  { %1966 = vrot.lane.b32.xlu1 %v1957_v43, %s3795_s19  ;;  %v1956_v63 = vmul.f32 %v4359_v13, %v1945_v15 }
 0xee1   :  { %v1951_v17 = vpop.permute.xlu1 %1950 }
 0xee2   :  { %v1959_v47 = vmul.f32 %v4363_v58, %v1951_v17  ;;  %1964 = vrot.lane.b32.xlu0 %v1956_v63, %s3795_s19 }
 0xee3   :  { %v1949_v19 = vpop.permute.xlu0 %1948 }
 0xee4   :  { %v1958_v48 = vmul.f32 %v4367_v6, %v1949_v19  ;;  %1970 = vrot.lane.b32.xlu1 %v1959_v47, %s3795_s19  ;;  %v2241_v47 = vld [vmem:[#allocation3] sm:$0xff]  ;;  %v2243_v19 = vld [vmem:[#allocation3 + $0x10] sm:$0xff] }
 0xee5   :  { %v1084_v0 = vpop.permute.xlu1 %1083 }
 0xee6   :  { %v1094_v35 = vadd.f32 %v1084_v0, %v1054_v32  ;;  %1968 = vrot.lane.b32.xlu0 %v1958_v48, %s3795_s19  ;;  %v2244_v48 = vld [vmem:[#allocation3 + $0x18] sm:$0xff]  ;;  %v2245_v32 = vld [vmem:[#allocation3 + $0x20] sm:$0xff]  ;;  %v2246_v0 = vld [vmem:[#allocation3 + $0x28] sm:$0xff] }
 0xee7   :  { %v1082_v49 = vpop.permute.xlu0 %1081 }
 0xee8   :  { %3615 = vtanh.f32 %v1094_v35  ;;  %v1093_v50 = vadd.f32 %v1082_v49, %v1053_v39  ;;  %v2247_v35 = vld [vmem:[#allocation3 + $0x30] sm:$0xff]  ;;  %v2248_v39 = vld [vmem:[#allocation3 + $0x38] sm:$0xff]  ;;  %v2478_v49 = vld [vmem:[%s4787_s9 + $0x8] sm:$0xff] }
 0xee9   :  { %v1088_v53 = vpop.permute.xlu1 %1087  ;;  %3376 = vmatprep.subr.mxu1 %v2478_v49 }
 0xeea   :  { %3617 = vtanh.f32 %v1093_v50  ;;  %v1096_v54 = vadd.f32 %v1088_v53, %v1056_v51  ;;  %v2477_v53 = vld [vmem:[%s4787_s9] sm:$0xff] }
 0xeeb   :  { %v1086_v52 = vpop.permute.xlu0 %1085 }
 0xeec   :  { %3619 = vtanh.f32 %v1096_v54  ;;  %v1095_v57 = vadd.f32 %v1086_v52, %v1055_v56 }
 0xeee   :  { %3621 = vtanh.f32 %v1095_v57 }
 0xef5   :  { %v3616_v60 = vpop.eup %3615 }
 0xef6   :  { %1107 = vrot.lane.b32.xlu1 %v3616_v60, %s3794_s18 }
 0xef7   :  { %v3618_v55 = vpop.eup %3617 }
 0xef8   :  { %1105 = vrot.lane.b32.xlu0 %v3618_v55, %s3794_s18 }
 0xef9   :  { %v3620_v38 = vpop.eup %3619 }
 0xefa   :  { %1111 = vrot.lane.b32.xlu1 %v3620_v38, %s3794_s18 }
 0xefb   :  { %v3622_v59 = vpop.eup %3621 }
 0xefc   :  { %1109 = vrot.lane.b32.xlu0 %v3622_v59, %s3794_s18 }
 0xf52   :  { %v1967_v61 = vpop.permute.xlu1 %1966 }
 0xf53   :  { %v4386_v44 = vadd.f32 %v1967_v61, %v1937_v41 }
 0xf54   :  { %v1965_v2 = vpop.permute.xlu0 %1964 }
 0xf55   :  { %3623 = vtanh.f32 %v4386_v44  ;;  %v4391_v5 = vadd.f32 %v1965_v2, %v1936_v62  ;;  %v4473_v62 = vld [vmem:[%s4788_s8] ss:$0 sm:$0xff] }
 0xf56   :  { %v1971_v8 = vpop.permute.xlu1 %1970 }
 0xf57   :  { %3625 = vtanh.f32 %v4391_v5  ;;  %v4396_v29 = vadd.f32 %v1971_v8, %v1939_v36 }
 0xf58   :  { %v1969_v11 = vpop.permute.xlu0 %1968 }
 0xf59   :  { %3627 = vtanh.f32 %v4396_v29  ;;  %v4401_v4 = vadd.f32 %v1969_v11, %v1938_v1 }
 0xf5b   :  { %3629 = vtanh.f32 %v4401_v4 }
 0xf62   :  { %v3624_v40 = vpop.eup %3623 }
 0xf63   :  { %1990 = vrot.lane.b32.xlu1 %v3624_v40, %s3794_s18 }
 0xf64   :  { %v3626_v45 = vpop.eup %3625 }
 0xf65   :  { %1988 = vrot.lane.b32.xlu0 %v3626_v45, %s3794_s18 }
 0xf66   :  { %v3628_v7 = vpop.eup %3627 }
 0xf67   :  { %1994 = vrot.lane.b32.xlu1 %v3628_v7, %s3794_s18 }
 0xf68   :  { %v3630_v14 = vpop.eup %3629  ;;  %v1108_v16 = vpop.permute.xlu1 %1107 }
 0xf69   :  { %v1118_v18 = vmul.f32 %v4338_v33, %v1108_v16  ;;  %1992 = vrot.lane.b32.xlu0 %v3630_v14, %s3794_s18  ;;  %v2258_v33 = vld [vmem:[%s4786_s7 + $0x8] sm:$0xff] }
 0xf6a   :  { %v1106_v22 = vpop.permute.xlu0 %1105  ;;  %3348 = vmatprep.subr.mxu0 %v2258_v33 }
 0xf6b   :  { %v1117_v23 = vmul.f32 %v4343_v12, %v1106_v22  ;;  %1127 = vrot.lane.b32.xlu1 %v1118_v18, %s3795_s19  ;;  %3349 = vmatpush3.msra.mxu0 %v2258_v33  ;;  %v2257_v12 = vld [vmem:[%s4786_s7] sm:$0xff] }
 0xf6c   :  { %v1112_v27 = vpop.permute.xlu1 %1111  ;;  %3350 = vmatprep.subr.mxu0 %v2257_v12 }
 0xf6d   :  { %v1120_v24 = vmul.f32 %v4347_v9, %v1112_v27  ;;  %1125 = vrot.lane.b32.xlu0 %v1117_v23, %s3795_s19  ;;  %3351 = vmatpush3.msra.mxu0 %v2257_v12 }
 0xf6e   :  { %v1110_v42 = vpop.permute.xlu0 %1109 }
 0xf6f   :  { %v1119_v25 = vmul.f32 %v4351_v20, %v1110_v42  ;;  %1131 = vrot.lane.b32.xlu1 %v1120_v24, %s3795_s19 }
 0xf71   :  { %1129 = vrot.lane.b32.xlu0 %v1119_v25, %s3795_s19 }
 0xfd5   :  { %v1991_v26 = vpop.permute.xlu1 %1990 }
 0xfd6   :  { %v2001_v9 = vmul.f32 %v4356_v46, %v1991_v26 }
 0xfd7   :  { %v1989_v28 = vpop.permute.xlu0 %1988 }
 0xfd8   :  { %2010 = vrot.lane.b32.xlu1 %v2001_v9, %s3795_s19  ;;  %v2000_v3 = vmul.f32 %v4359_v13, %v1989_v28 }
 0xfd9   :  { %v1995_v30 = vpop.permute.xlu1 %1994 }
 0xfda   :  { %v2003_v31 = vmul.f32 %v4363_v58, %v1995_v30  ;;  %2008 = vrot.lane.b32.xlu0 %v2000_v3, %s3795_s19  ;;  %v3792_v3 = vld [vmem:[%s4785_s6] ss:$0 sm:$0xff] }
 0xfdb   :  { %v1993_v20 = vpop.permute.xlu0 %1992 }
 0xfdc   :  { %v2002_v34 = vmul.f32 %v4367_v6, %v1993_v20  ;;  %2014 = vrot.lane.b32.xlu1 %v2003_v31, %s3795_s19  ;;  %v2242_v6 = vld [vmem:[#allocation3 + $0x8] sm:$0xff] }
 0xfdd   :  { %v1128_v37 = vpop.permute.xlu1 %1127 }
 0xfde   :  { %1138 = vst.msk [vmem:[#allocation3 + $0x68] sm:$0xff] %vm281_vm1, %v1128_v37  ;;  %2012 = vrot.lane.b32.xlu0 %v2002_v34, %s3795_s19 }
 0xfdf   :  { %v1126_v46 = vpop.permute.xlu0 %1125 }
 0xfe0   :  { %1137 = vst.msk [vmem:[#allocation3 + $0x60] sm:$0xff] %vm281_vm1, %v1126_v46 }
 0xfe1   :  { %v1132_v43 = vpop.permute.xlu1 %1131 }
 0xfe2   :  { %1140 = vst.msk [vmem:[#allocation3 + $0x78] sm:$0xff] %vm281_vm1, %v1132_v43 }
 0xfe3   :  { %v1130_v13 = vpop.permute.xlu0 %1129 }
 0xfe4   :  { %1139 = vst.msk [vmem:[#allocation3 + $0x70] sm:$0xff] %vm281_vm1, %v1130_v13 }
 0xfe5   :  { %v1154_v63 = vld [vmem:[#allocation3 + $0x68] sm:$0xff] }
 0xfe7   :  { %v1153_v15 = vld [vmem:[#allocation3 + $0x60] sm:$0xff] }
 0xfe8   :  { %3282 = vmatprep.mubr.msk.f32.mxu0 %vm281_vm1, %v1153_v15 }
 0xfe9   :  { %3283 = vmatmul.mubr.msk.f32.gmra.mxu0 %vm281_vm1, %v1154_v63  ;;  %v1156_v17 = vld [vmem:[#allocation3 + $0x78] sm:$0xff] }
 0xfeb   :  { %v1155_v58 = vld [vmem:[#allocation3 + $0x70] sm:$0xff] }
 0xfec   :  { %3285 = vmatprep.mubr.msk.f32.mxu0 %vm281_vm1, %v1155_v58 }
 0xfed   :  { %3286 = vmatmul.mubr.msk.f32.gmra.mxu0 %vm281_vm1, %v1156_v17 }
 0xfee   :  { %3352 = vmatprep.mubr.msk.f32.mxu0 %vm281_vm1, %v2241_v47 }
 0xff1   :  { %3353 = vmatmul.mubr.msk.f32.vlgmr.msra.gmra.mxu0 %vm281_vm1, %v2242_v6 }
 0xff2   :  { %3355 = vmatprep.mubr.msk.f32.mxu0 %vm281_vm1, %v2243_v19 }
 0xff5   :  { %3356 = vmatmul.mubr.msk.f32.gmra.mxu0 %vm281_vm1, %v2244_v48 }
 0xff6   :  { %3358 = vmatprep.mubr.msk.f32.mxu0 %vm281_vm1, %v2245_v32 }
 0xff9   :  { %3359 = vmatmul.mubr.msk.f32.gmra.mxu0 %vm281_vm1, %v2246_v0 }
 0xffa   :  { %3361 = vmatprep.mubr.msk.f32.mxu0 %vm281_vm1, %v2247_v35 }
 0xffd   :  { %3362 = vmatmul.mubr.msk.f32.gmra.mxu0 %vm281_vm1, %v2248_v39 }
0x104a   :  { %v2011_v50 = vpop.permute.xlu1 %2010 }
0x104b   :  { %2021 = vst.msk [vmem:[#allocation3 + $0x48] sm:$0xff] %vm281_vm1, %v2011_v50 }
0x104c   :  { %v2009_v51 = vpop.permute.xlu0 %2008 }
0x104d   :  { %2020 = vst.msk [vmem:[#allocation3 + $0x40] sm:$0xff] %vm281_vm1, %v2009_v51  ;;  %3338 = vmatprep.mubr.msk.f32.mxu1 %vm281_vm1, %v2009_v51 }
0x104e   :  { %v2015_v54 = vpop.permute.xlu1 %2014  ;;  %3339 = vmatmul.mubr.msk.f32.vlgmr.msra.gmra.mxu1 %vm281_vm1, %v2011_v50 }
0x104f   :  { %2023 = vst.msk [vmem:[#allocation3 + $0x58] sm:$0xff] %vm281_vm1, %v2015_v54  ;;  %3377 = vmatpush3.msra.mxu1 %v2478_v49 }
0x1050   :  { %v2013_v56 = vpop.permute.xlu0 %2012  ;;  %3378 = vmatprep.subr.mxu1 %v2477_v53 }
0x1051   :  { %2022 = vst.msk [vmem:[#allocation3 + $0x50] sm:$0xff] %vm281_vm1, %v2013_v56  ;;  %3341 = vmatprep.mubr.msk.f32.mxu1 %vm281_vm1, %v2013_v56  ;;  %3379 = vmatpush3.msra.mxu1 %v2477_v53 }
0x1052   :  { %3342 = vmatmul.mubr.msk.f32.gmra.mxu1 %vm281_vm1, %v2015_v54  ;;  %v2250_v57 = vld [vmem:[#allocation3 + $0x48] sm:$0xff] }
0x1054   :  { %v2249_v52 = vld [vmem:[#allocation3 + $0x40] sm:$0xff] }
0x1055   :  { %3364 = vmatprep.mubr.msk.f32.mxu0 %vm281_vm1, %v2249_v52 }
0x1056   :  { %3365 = vmatmul.mubr.msk.f32.gmra.mxu0 %vm281_vm1, %v2250_v57  ;;  %v2252_v55 = vld [vmem:[#allocation3 + $0x58] sm:$0xff] }
0x1058   :  { %v2251_v60 = vld [vmem:[#allocation3 + $0x50] sm:$0xff] }
0x1059   :  { %3367 = vmatprep.mubr.msk.f32.mxu0 %vm281_vm1, %v2251_v60 }
0x105a   :  { %3368 = vmatmul.mubr.msk.f32.gmra.mxu0 %vm281_vm1, %v2252_v55 }
0x10a9   :  { %v3284_v38 = vpop.f32.mrf.mxu0 }
0x10aa   :  { %v1352_v30 = vadd.f32 %v3792_v3, %v3284_v38 }
0x10ab   :  { %v1346_v59 = vpop.f32.mrf.mxu0 }
0x10ac   :  { %v1347_v20 = vadd.f32 %v3792_v3, %v1346_v59 }
0x10ad   :  { %v3287_v41 = vpop.f32.mrf.mxu0 }
0x10ae   :  { %v1362_v46 = vadd.f32 %v3792_v3, %v3287_v41 }
0x10af   :  { %v1356_v61 = vpop.f32.mrf.mxu0 }
0x10b0   :  { %v1357_v15 = vadd.f32 %v3792_v3, %v1356_v61 }
0x10b1   :  { %v3354_v2 = vpop.f32.mrf.mxu0 }
0x10b2   :  { %v2388_v36 = vadd.f32 %v3354_v2, %v4473_v62 }
0x10b3   :  { %v2382_v8 = vpop.f32.mrf.mxu0 }
0x10b4   :  { %v2383_v1 = vadd.f32 %v4473_v62, %v2382_v8 }
0x10b5   :  { %v3357_v11 = vpop.f32.mrf.mxu0 }
0x10b6   :  { %3631 = vtanh.f32 %v2383_v1  ;;  %v2398_v40 = vadd.f32 %v3357_v11, %v4473_v62 }
0x10b7   :  { %3633 = vtanh.f32 %v2388_v36  ;;  %v2392_v45 = vpop.f32.mrf.mxu0 }
0x10b8   :  { %v2393_v7 = vadd.f32 %v4473_v62, %v2392_v45 }
0x10b9   :  { %v3360_v14 = vpop.f32.mrf.mxu0 }
0x10ba   :  { %3635 = vtanh.f32 %v2393_v7  ;;  %v2408_v16 = vadd.f32 %v3360_v14, %v4473_v62 }
0x10bb   :  { %3637 = vtanh.f32 %v2398_v40  ;;  %v2402_v10 = vpop.f32.mrf.mxu0 }
0x10bc   :  { %v2403_v18 = vadd.f32 %v4473_v62, %v2402_v10 }
0x10bd   :  { %v3363_v21 = vpop.f32.mrf.mxu0 }
0x10be   :  { %3639 = vtanh.f32 %v2403_v18  ;;  %v2418_v22 = vadd.f32 %v3363_v21, %v4473_v62 }
0x10bf   :  { %3641 = vtanh.f32 %v2408_v16  ;;  %v2412_v23 = vpop.f32.mrf.mxu0 }
0x10c0   :  { %v2413_v27 = vadd.f32 %v4473_v62, %v2412_v23 }
0x10c2   :  { %3643 = vtanh.f32 %v2413_v27 }
0x10c3   :  { %v3632_v33 = vpop.eup %3631  ;;  %3645 = vtanh.f32 %v2418_v22 }
0x10c4   :  { %v3634_v24 = vpop.eup %3633  ;;  %3380 = vmatprep.mubr.msk.f32.mxu1 %vm67_vm0, %v3632_v33 }
0x10c5   :  { %3381 = vmatmul.mubr.msk.f32.vlgmr.msra.gmra.mxu1 %vm67_vm0, %v3634_v24 }
0x10c7   :  { %v3636_v42 = vpop.eup %3635 }
0x10c8   :  { %v3638_v12 = vpop.eup %3637  ;;  %3383 = vmatprep.mubr.msk.f32.mxu1 %vm67_vm0, %v3636_v42 }
0x10c9   :  { %3384 = vmatmul.mubr.msk.f32.gmra.mxu1 %vm67_vm0, %v3638_v12 }
0x10cb   :  { %v3640_v25 = vpop.eup %3639 }
0x10cc   :  { %v3642_v26 = vpop.eup %3641  ;;  %3386 = vmatprep.mubr.msk.f32.mxu1 %vm67_vm0, %v3640_v25 }
0x10cd   :  { %3387 = vmatmul.mubr.msk.f32.gmra.mxu1 %vm67_vm0, %v3642_v26 }
0x10cf   :  { %v3644_v9 = vpop.eup %3643 }
0x10d0   :  { %v3646_v28 = vpop.eup %3645  ;;  %3389 = vmatprep.mubr.msk.f32.mxu1 %vm67_vm0, %v3644_v9 }
0x10d1   :  { %3390 = vmatmul.mubr.msk.f32.gmra.mxu1 %vm67_vm0, %v3646_v28 }
0x110e   :  { %v3340_v31 = vpop.f32.mrf.mxu1 }
0x110f   :  { %v2122_v34 = vadd.f32 %v3340_v31, %v1352_v30 }
0x1110   :  { %v2102_v37 = vpop.f32.mrf.mxu1 }
0x1111   :  { %3647 = vtanh.f32 %v2122_v34  ;;  %v2121_v43 = vadd.f32 %v2102_v37, %v1347_v20  ;;  %v2995_v60 = vmul.f32 -1.442695, %v2122_v34 }
0x1112   :  { %v3343_v13 = vpop.f32.mrf.mxu1 }
0x1113   :  { %v2124_v63 = vadd.f32 %v3343_v13, %v1362_v46  ;;  %3649 = vtanh.f32 %v2121_v43  ;;  %v2994_v55 = vmul.f32 -1.442695, %v2121_v43 }
0x1114   :  { %v2112_v58 = vpop.f32.mrf.mxu1 }
0x1115   :  { %v2123_v17 = vadd.f32 %v2112_v58, %v1357_v15  ;;  %3651 = vtanh.f32 %v2124_v63  ;;  %v2997_v38 = vmul.f32 -1.442695, %v2124_v63 }
0x1116   :  { %v3366_v47 = vpop.f32.mrf.mxu0 }
0x1117   :  { %3653 = vtanh.f32 %v2123_v17  ;;  %v2428_v6 = vadd.f32 %v3366_v47, %v4473_v62  ;;  %v2996_v59 = vmul.f32 -1.442695, %v2123_v17 }
0x1118   :  { %v2422_v19 = vpop.f32.mrf.mxu0 }
0x1119   :  { %v2423_v48 = vadd.f32 %v4473_v62, %v2422_v19 }
0x111a   :  { %v3369_v32 = vpop.f32.mrf.mxu0 }
0x111b   :  { %3655 = vtanh.f32 %v2423_v48  ;;  %v2438_v0 = vadd.f32 %v3369_v32, %v4473_v62 }
0x111c   :  { %3657 = vtanh.f32 %v2428_v6  ;;  %v2432_v35 = vpop.f32.mrf.mxu0 }
0x111d   :  { %v2433_v39 = vadd.f32 %v4473_v62, %v2432_v35 }
0x111e   :  { %v3648_v49 = vpop.eup %3647 }
0x111f   :  { %3659 = vtanh.f32 %v2433_v39  ;;  %2163 = vrot.lane.b32.xlu1 %v3648_v49, %s3794_s18  ;;  %v4525_v49 = vld [vmem:[%s4789_s10] ss:$0 sm:$0xff] }
0x1120   :  { %3661 = vtanh.f32 %v2438_v0  ;;  %v3650_v50 = vpop.eup %3649 }
0x1121   :  { %2161 = vrot.lane.b32.xlu0 %v3650_v50, %s3794_s18  ;;  %3663 = vpow2.f32 %v2995_v60 }
0x1122   :  { %v3652_v51 = vpop.eup %3651  ;;  %3665 = vpow2.f32 %v2994_v55 }
0x1123   :  { %2167 = vrot.lane.b32.xlu1 %v3652_v51, %s3794_s18  ;;  %3667 = vpow2.f32 %v2997_v38 }
0x1124   :  { %v3654_v53 = vpop.eup %3653  ;;  %3669 = vpow2.f32 %v2996_v59 }
0x1125   :  { %2165 = vrot.lane.b32.xlu0 %v3654_v53, %s3794_s18 }
0x1128   :  { %v3656_v54 = vpop.eup %3655 }
0x1129   :  { %v3658_v56 = vpop.eup %3657  ;;  %3392 = vmatprep.mubr.msk.f32.mxu1 %vm67_vm0, %v3656_v54 }
0x112a   :  { %3393 = vmatmul.mubr.msk.f32.gmra.mxu1 %vm67_vm0, %v3658_v56 }
0x112c   :  { %v3660_v52 = vpop.eup %3659 }
0x112d   :  { %v3662_v57 = vpop.eup %3661  ;;  %3395 = vmatprep.mubr.msk.f32.mxu1 %vm67_vm0, %v3660_v52 }
0x112e   :  { %3396 = vmatmul.mubr.msk.f32.gmra.mxu1 %vm67_vm0, %v3662_v57  ;;  %v3664_v41 = vpop.eup %3663 }
0x112f   :  { %v3666_v61 = vpop.eup %3665  ;;  %v2138_v2 = vadd.f32 1.0, %v3664_v41 }
0x1130   :  { %v3668_v36 = vpop.eup %3667  ;;  %v2137_v8 = vadd.f32 1.0, %v3666_v61 }
0x1131   :  { %v3670_v1 = vpop.eup %3669  ;;  %3671 = vrcp.f32 %v2138_v2  ;;  %v2140_v11 = vadd.f32 1.0, %v3668_v36 }
0x1132   :  { %3673 = vrcp.f32 %v2137_v8  ;;  %v2139_v40 = vadd.f32 1.0, %v3670_v1 }
0x1133   :  { %3675 = vrcp.f32 %v2140_v11 }
0x1134   :  { %3677 = vrcp.f32 %v2139_v40 }
0x113e   :  { %v3672_v45 = vpop.eup %3671 }
0x113f   :  { %v3674_v16 = vpop.eup %3673  ;;  %v2154_v42 = vmul.f32 %v3672_v45, %v4386_v44 }
0x1140   :  { %v3676_v21 = vpop.eup %3675  ;;  %v2153_v26 = vmul.f32 %v3674_v16, %v4391_v5 }
0x1141   :  { %v3678_v27 = vpop.eup %3677  ;;  %v2156_v3 = vmul.f32 %v3676_v21, %v4396_v29 }
0x1142   :  { %v2155_v20 = vmul.f32 %v3678_v27, %v4401_v4 }
0x1185   :  { %v3382_v29 = vpop.f32.mrf.mxu1 }
0x1186   :  { %v2606_v53 = vadd.f32 %v3382_v29, %v4525_v49 }
0x1187   :  { %v2600_v13 = vpop.f32.mrf.mxu1 }
0x1188   :  { %v2601_v50 = vadd.f32 %v4525_v49, %v2600_v13 }
0x1189   :  { %v3385_v63 = vpop.f32.mrf.mxu1 }
0x118a   :  { %v2616_v57 = vadd.f32 %v3385_v63, %v4525_v49 }
0x118b   :  { %v2610_v6 = vpop.f32.mrf.mxu1 }
0x118c   :  { %v2611_v54 = vadd.f32 %v4525_v49, %v2610_v6 }
0x118d   :  { %v3388_v0 = vpop.f32.mrf.mxu1 }
0x118e   :  { %v2626_v38 = vadd.f32 %v3388_v0, %v4525_v49 }
0x118f   :  { %v2620_v35 = vpop.f32.mrf.mxu1 }
0x1190   :  { %v2621_v52 = vadd.f32 %v4525_v49, %v2620_v35 }
0x1191   :  { %v2164_v7 = vpop.permute.xlu1 %2163  ;;  %v3391_v39 = vpop.f32.mrf.mxu1 }
0x1192   :  { %v2174_v14 = vmul.f32 %v3672_v45, %v2164_v7  ;;  %v2636_v61 = vadd.f32 %v3391_v39, %v4525_v49 }
0x1193   :  { %v2162_v10 = vpop.permute.xlu0 %2161  ;;  %v2630_v51 = vpop.f32.mrf.mxu1 }
0x1194   :  { %2183 = vrot.lane.b32.xlu1 %v2174_v14, %s3795_s19  ;;  %v2173_v18 = vmul.f32 %v3674_v16, %v2162_v10  ;;  %v2631_v55 = vadd.f32 %v4525_v49, %v2630_v51 }
0x1195   :  { %v2168_v22 = vpop.permute.xlu1 %2167 }
0x1196   :  { %v2176_v23 = vmul.f32 %v3676_v21, %v2168_v22  ;;  %2181 = vrot.lane.b32.xlu0 %v2173_v18, %s3795_s19 }
0x1197   :  { %v2166_v33 = vpop.permute.xlu0 %2165 }
0x1198   :  { %v2175_v24 = vmul.f32 %v3678_v27, %v2166_v33  ;;  %2187 = vrot.lane.b32.xlu1 %v2176_v23, %s3795_s19 }
0x119a   :  { %2185 = vrot.lane.b32.xlu0 %v2175_v24, %s3795_s19 }
0x11ea   :  { %v3394_v56 = vpop.f32.mrf.mxu1 }
0x11eb   :  { %v2646_v11 = vadd.f32 %v3394_v56, %v4525_v49 }
0x11ec   :  { %v2640_v60 = vpop.f32.mrf.mxu1 }
0x11ed   :  { %v2641_v41 = vadd.f32 %v4525_v49, %v2640_v60 }
0x11ee   :  { %v3397_v59 = vpop.f32.mrf.mxu1 }
0x11f0   :  { %v2650_v2 = vpop.f32.mrf.mxu1 }
0x11f1   :  { %v2651_v8 = vadd.f32 %v4525_v49, %v2650_v2 }
0x1206   :  { %v2184_v12 = vpop.permute.xlu1 %2183 }
0x1207   :  { %v2194_v25 = vadd.f32 %v2184_v12, %v2154_v42 }
0x1208   :  { %v2182_v9 = vpop.permute.xlu0 %2181 }
0x1209   :  { %3679 = vtanh.f32 %v2194_v25  ;;  %v2193_v28 = vadd.f32 %v2182_v9, %v2153_v26 }
0x120a   :  { %v2188_v30 = vpop.permute.xlu1 %2187 }
0x120b   :  { %3681 = vtanh.f32 %v2193_v28  ;;  %v2196_v31 = vadd.f32 %v2188_v30, %v2156_v3 }
0x120c   :  { %v2186_v34 = vpop.permute.xlu0 %2185 }
0x120d   :  { %3683 = vtanh.f32 %v2196_v31  ;;  %v2195_v37 = vadd.f32 %v2186_v34, %v2155_v20 }
0x120f   :  { %3685 = vtanh.f32 %v2195_v37 }
0x1210   :  { %3687 = vtanh.f32 %v2601_v50 }
0x1211   :  { %3689 = vtanh.f32 %v2606_v53 }
0x1212   :  { %3691 = vtanh.f32 %v2611_v54 }
0x1213   :  { %3693 = vtanh.f32 %v2621_v52 }
0x1214   :  { %3695 = vtanh.f32 %v2616_v57 }
0x1215   :  { %3697 = vtanh.f32 %v2631_v55 }
0x1216   :  { %v3680_v46 = vpop.eup %3679  ;;  %3699 = vtanh.f32 %v2626_v38 }
0x1217   :  { %2207 = vrot.lane.b32.xlu1 %v3680_v46, %s3794_s18  ;;  %3701 = vtanh.f32 %v2641_v41 }
0x1218   :  { %v3682_v44 = vpop.eup %3681  ;;  %3703 = vtanh.f32 %v2636_v61 }
0x1219   :  { %2205 = vrot.lane.b32.xlu0 %v3682_v44, %s3794_s18  ;;  %3705 = vtanh.f32 %v2651_v8 }
0x121a   :  { %v3684_v5 = vpop.eup %3683  ;;  %3707 = vtanh.f32 %v2646_v11 }
0x121b   :  { %2211 = vrot.lane.b32.xlu1 %v3684_v5, %s3794_s18 }
0x121c   :  { %v3686_v43 = vpop.eup %3685 }
0x121d   :  { %2209 = vrot.lane.b32.xlu0 %v3686_v43, %s3794_s18  ;;  %v4536_v36 = vpop.eup %3687 }
0x121e   :  { %v4539_v1 = vpop.eup %3689  ;;  %v2696_v40 = vsel %vm2695_vm2, %v4536_v36, -inf }
0x121f   :  { %v2699_v7 = vsel %vm2695_vm2, %v4539_v1, -inf }
0x1289   :  { %v2208_v15 = vpop.permute.xlu1 %2207 }
0x128a   :  { %v2218_v4 = vmul.f32 %v3672_v45, %v2208_v15  ;;  %v4544_v45 = vpop.eup %3691 }
0x128b   :  { %v2206_v58 = vpop.permute.xlu0 %2205  ;;  %v4548_v14 = vpop.eup %3693  ;;  %v2702_v10 = vsel %vm2695_vm2, %v4544_v45, -inf }
0x128c   :  { %2227 = vrot.lane.b32.xlu1 %v2218_v4, %s3795_s19  ;;  %v2217_v17 = vmul.f32 %v3674_v16, %v2206_v58  ;;  %v2656_v16 = vadd.f32 %v3397_v59, %v4525_v49  ;;  %v4553_v18 = vpop.eup %3695 }
0x128d   :  { %v2212_v47 = vpop.permute.xlu1 %2211  ;;  %v4557_v22 = vpop.eup %3697  ;;  %v2705_v23 = vsel %vm2695_vm2, %v4553_v18, -inf }
0x128e   :  { %v2220_v19 = vmul.f32 %v3676_v21, %v2212_v47  ;;  %2225 = vrot.lane.b32.xlu0 %v2217_v17, %s3795_s19  ;;  %v2708_v21 = vsel %vm2695_vm2, %v4548_v14, -inf  ;;  %3709 = vtanh.f32 %v2656_v16  ;;  %v2714_v33 = vsel %vm2695_vm2, %v4557_v22, -inf }
0x128f   :  { %v2210_v48 = vpop.permute.xlu0 %2209 }
0x1290   :  { %v2219_v32 = vmul.f32 %v3678_v27, %v2210_v48  ;;  %2231 = vrot.lane.b32.xlu1 %v2220_v19, %s3795_s19  ;;  %v4561_v27 = vpop.eup %3699 }
0x1291   :  { %v4565_v24 = vpop.eup %3701  ;;  %v2711_v42 = vsel %vm2695_vm2, %v4561_v27, -inf }
0x1292   :  { %2229 = vrot.lane.b32.xlu0 %v2219_v32, %s3795_s19  ;;  %v4569_v12 = vpop.eup %3703  ;;  %v2720_v25 = vsel %vm2695_vm2, %v4565_v24, -inf }
0x1293   :  { %v4573_v26 = vpop.eup %3705  ;;  %v2717_v9 = vsel %vm2695_vm2, %v4569_v12, -inf }
0x1294   :  { %v4577_v28 = vpop.eup %3707  ;;  %v2726_v3 = vsel %vm2695_vm2, %v4573_v26, -inf }
0x1295   :  { %v2723_v30 = vsel %vm2695_vm2, %v4577_v28, -inf }
0x129b   :  { %v4583_v31 = vpop.eup %3709 }
0x129c   :  { %v2729_v20 = vsel %vm2695_vm2, %v4583_v31, -inf }
0x12b1   :  { %2697 = vmax.xlane.f32.xlu0 %v2696_v40 }
0x12b4   :  { %2700 = vmax.xlane.f32.xlu1 %v2699_v7 }
0x12b5   :  { %2703 = vmax.xlane.f32.xlu0 %v2702_v10 }
0x12b8   :  { %2709 = vmax.xlane.f32.xlu1 %v2708_v21 }
0x12b9   :  { %2706 = vmax.xlane.f32.xlu0 %v2705_v23 }
0x12bc   :  { %2715 = vmax.xlane.f32.xlu1 %v2714_v33 }
0x12bd   :  { %2712 = vmax.xlane.f32.xlu0 %v2711_v42 }
0x12c0   :  { %2721 = vmax.xlane.f32.xlu1 %v2720_v25 }
0x12c1   :  { %2718 = vmax.xlane.f32.xlu0 %v2717_v9 }
0x12c4   :  { %2727 = vmax.xlane.f32.xlu1 %v2726_v3 }
0x12c5   :  { %2724 = vmax.xlane.f32.xlu0 %v2723_v30 }
0x12c9   :  { %2730 = vmax.xlane.f32.xlu0 %v2729_v20 }
0x12fe   :  { %v2228_v34 = vpop.permute.xlu1 %2227 }
0x12ff   :  { %2238 = vst.msk [vmem:[#allocation3 + $0x68] sm:$0xff] %vm281_vm1, %v2228_v34 }
0x1300   :  { %v2226_v37 = vpop.permute.xlu0 %2225 }
0x1301   :  { %2237 = vst.msk [vmem:[#allocation3 + $0x60] sm:$0xff] %vm281_vm1, %v2226_v37 }
0x1302   :  { %v2232_v46 = vpop.permute.xlu1 %2231 }
0x1303   :  { %2240 = vst.msk [vmem:[#allocation3 + $0x78] sm:$0xff] %vm281_vm1, %v2232_v46 }
0x1304   :  { %v2230_v44 = vpop.permute.xlu0 %2229 }
0x1305   :  { %2239 = vst.msk [vmem:[#allocation3 + $0x70] sm:$0xff] %vm281_vm1, %v2230_v44 }
0x1306   :  { %v2254_v43 = vld [vmem:[#allocation3 + $0x68] sm:$0xff] }
0x1308   :  { %v2253_v5 = vld [vmem:[#allocation3 + $0x60] sm:$0xff] }
0x1309   :  { %3370 = vmatprep.mubr.msk.f32.mxu0 %vm281_vm1, %v2253_v5 }
0x130a   :  { %3371 = vmatmul.mubr.msk.f32.gmra.mxu0 %vm281_vm1, %v2254_v43  ;;  %v2256_v13 = vld [vmem:[#allocation3 + $0x78] sm:$0xff] }
0x130c   :  { %v2255_v29 = vld [vmem:[#allocation3 + $0x70] sm:$0xff] }
0x130d   :  { %3373 = vmatprep.mubr.msk.f32.mxu0 %vm281_vm1, %v2255_v29 }
0x130e   :  { %3374 = vmatmul.mubr.msk.f32.gmra.mxu0 %vm281_vm1, %v2256_v13 }
0x133a   :  { %v2698_v39 = vpop.xlane.xlu0 %2697 }
0x133b   :  { %v4608_v55 = vsub.f32 %v4536_v36, %v2698_v39 }
0x133d   :  { %v2701_v53 = vpop.xlane.xlu1 %2700  ;;  %v2760_v11 = vmul.f32 1.442695, %v4608_v55 }
0x133e   :  { %v2704_v50 = vpop.xlane.xlu0 %2703 }
0x133f   :  { %v4618_v40 = vsub.f32 %v4544_v45, %v2704_v50 }
0x1341   :  { %v2710_v57 = vpop.xlane.xlu1 %2709 }
0x1342   :  { %v2707_v51 = vpop.xlane.xlu0 %2706  ;;  %v4627_v21 = vsub.f32 %v4548_v14, %v2710_v57 }
0x1343   :  { %v4613_v61 = vsub.f32 %v4553_v18, %v2707_v51  ;;  %v2764_v18 = vmul.f32 1.442695, %v4618_v40 }
0x1344   :  { %v2768_v42 = vmul.f32 1.442695, %v4627_v21 }
0x1345   :  { %v2716_v7 = vpop.xlane.xlu1 %2715  ;;  %v2766_v16 = vmul.f32 1.442695, %v4613_v61 }
0x1346   :  { %v2713_v54 = vpop.xlane.xlu0 %2712 }
0x1347   :  { %v4623_v10 = vsub.f32 %v4561_v27, %v2713_v54  ;;  %v4635_v27 = vsub.f32 %v4557_v22, %v2716_v7 }
0x1349   :  { %v2770_v45 = vmul.f32 1.442695, %v4623_v10  ;;  %v2722_v33 = vpop.xlane.xlu1 %2721  ;;  %v2772_v20 = vmul.f32 1.442695, %v4635_v27 }
0x134a   :  { %v2719_v8 = vpop.xlane.xlu0 %2718  ;;  %v4649_v22 = vsub.f32 %v4565_v24, %v2722_v33 }
0x134c   :  { %v2776_v24 = vmul.f32 1.442695, %v4649_v22 }
0x134e   :  { %v2725_v23 = vpop.xlane.xlu0 %2724 }
0x134f   :  { %v4641_v9 = vsub.f32 %v4577_v28, %v2725_v23  ;;  %v2728_v28 = vpop.xlane.xlu1 %2727 }
0x1350   :  { %v4663_v13 = vsub.f32 %v4573_v26, %v2728_v28 }
0x1351   :  { %v2778_v44 = vmul.f32 1.442695, %v4641_v9 }
0x1352   :  { %v2731_v30 = vpop.xlane.xlu0 %2730 }
0x1353   :  { %v4657_v5 = vsub.f32 %v4583_v31, %v2731_v30 }
0x13ca   :  { %v3372_v15 = vpop.f32.mrf.mxu0 }
0x13cb   :  { %v2448_v4 = vadd.f32 %v3372_v15, %v4473_v62 }
0x13cc   :  { %v2442_v63 = vpop.f32.mrf.mxu0 }
0x13cd   :  { %v2443_v58 = vadd.f32 %v4473_v62, %v2442_v63  ;;  %v2782_v63 = vmul.f32 1.442695, %v4657_v5 }
0x13ce   :  { %v3375_v17 = vpop.f32.mrf.mxu0 }
0x13cf   :  { %3711 = vtanh.f32 %v2443_v58  ;;  %v2458_v47 = vadd.f32 %v3375_v17, %v4473_v62  ;;  %v2780_v17 = vmul.f32 1.442695, %v4663_v13 }
0x13d0   :  { %3713 = vtanh.f32 %v2448_v4  ;;  %v2452_v6 = vpop.f32.mrf.mxu0 }
0x13d1   :  { %v2453_v19 = vadd.f32 %v4473_v62, %v2452_v6  ;;  %v4604_v62 = vsub.f32 %v4539_v1, %v2701_v53 }
0x13d3   :  { %3715 = vtanh.f32 %v2453_v19  ;;  %v2762_v59 = vmul.f32 1.442695, %v4604_v62 }
0x13d4   :  { %3717 = vtanh.f32 %v2458_v47 }
0x13dc   :  { %v3712_v48 = vpop.eup %3711 }
0x13dd   :  { %v3714_v32 = vpop.eup %3713  ;;  %3398 = vmatprep.mubr.msk.f32.mxu1 %vm67_vm0, %v3712_v48 }
0x13de   :  { %3399 = vmatmul.mubr.msk.f32.gmra.mxu1 %vm67_vm0, %v3714_v32 }
0x13e0   :  { %v3716_v0 = vpop.eup %3715 }
0x13e1   :  { %v3718_v35 = vpop.eup %3717  ;;  %3401 = vmatprep.mubr.msk.f32.mxu1 %vm67_vm0, %v3716_v0 }
0x13e2   :  { %3402 = vmatmul.mubr.msk.f32.gmra.mxu1 %vm67_vm0, %v3718_v35 }
0x149e   :  { %v3400_v56 = vpop.f32.mrf.mxu1 }
0x149f   :  { %v2666_v52 = vadd.f32 %v3400_v56, %v4525_v49 }
0x14a0   :  { %v2660_v60 = vpop.f32.mrf.mxu1 }
0x14a1   :  { %3719 = vtanh.f32 %v2666_v52  ;;  %v2661_v38 = vadd.f32 %v4525_v49, %v2660_v60 }
0x14a2   :  { %v3403_v41 = vpop.f32.mrf.mxu1 }
0x14a3   :  { %3721 = vtanh.f32 %v2661_v38  ;;  %v2676_v2 = vadd.f32 %v3403_v41, %v4525_v49 }
0x14a4   :  { %v2670_v1 = vpop.f32.mrf.mxu1 }
0x14a5   :  { %3723 = vtanh.f32 %v2676_v2  ;;  %v2671_v36 = vadd.f32 %v4525_v49, %v2670_v1  ;;  %v4631_v49 = vsub.f32 %v4569_v12, %v2719_v8 }
0x14a6   :  { %3725 = vpow2.f32 %v2762_v59 }
0x14a7   :  { %3727 = vtanh.f32 %v2671_v36  ;;  %v2774_v14 = vmul.f32 1.442695, %v4631_v49 }
0x14a8   :  { %3729 = vpow2.f32 %v2760_v11 }
0x14a9   :  { %3731 = vpow2.f32 %v2766_v16 }
0x14aa   :  { %3733 = vpow2.f32 %v2764_v18 }
0x14ab   :  { %3735 = vpow2.f32 %v2770_v45 }
0x14ac   :  { %3737 = vpow2.f32 %v2768_v42 }
0x14ad   :  { %3739 = vpow2.f32 %v2774_v14 }
0x14ae   :  { %v4637_v25 = vpop.eup %3719  ;;  %3741 = vpow2.f32 %v2772_v20 }
0x14af   :  { %v2735_v3 = vsel %vm2695_vm2, %v4637_v25, -inf  ;;  %3743 = vpow2.f32 %v2778_v44 }
0x14b0   :  { %v4645_v12 = vpop.eup %3721  ;;  %2736 = vmax.xlane.f32.xlu0 %v2735_v3  ;;  %3745 = vpow2.f32 %v2776_v24 }
0x14b1   :  { %v2732_v34 = vsel %vm2695_vm2, %v4645_v12, -inf  ;;  %3747 = vpow2.f32 %v2782_v63 }
0x14b2   :  { %v4653_v37 = vpop.eup %3723  ;;  %2733 = vmax.xlane.f32.xlu1 %v2732_v34  ;;  %3749 = vpow2.f32 %v2780_v17 }
0x14b3   :  { %v3726_v46 = vpop.eup %3725  ;;  %v2741_v43 = vsel %vm2695_vm2, %v4653_v37, -inf }
0x14b4   :  { %v3728_v29 = vpop.eup %3727  ;;  %2742 = vmax.xlane.f32.xlu0 %v2741_v43  ;;  %v2795_v31 = vsel %vm2695_vm2, %v3726_v46, 0.0 }
0x14b5   :  { %v2738_v15 = vsel %vm2695_vm2, %v3728_v29, -inf  ;;  %v3730_v4 = vpop.eup %3729 }
0x14b6   :  { %2739 = vmax.xlane.f32.xlu1 %v2738_v15  ;;  %v3732_v58 = vpop.eup %3731  ;;  %v2792_v47 = vsel %vm2695_vm2, %v3730_v4, 0.0 }
0x14b7   :  { %v3734_v6 = vpop.eup %3733  ;;  %v2801_v26 = vsel %vm2695_vm2, %v3732_v58, 0.0 }
0x14b8   :  { %2796 = vadd.xlane.f32.xlu0 %v2795_v31  ;;  %v3736_v19 = vpop.eup %3735  ;;  %v2798_v48 = vsel %vm2695_vm2, %v3734_v6, 0.0 }
0x14b9   :  { %v3738_v32 = vpop.eup %3737  ;;  %v2807_v0 = vsel %vm2695_vm2, %v3736_v19, 0.0 }
0x14ba   :  { %2793 = vadd.xlane.f32.xlu1 %v2792_v47  ;;  %v3740_v35 = vpop.eup %3739  ;;  %v2804_v39 = vsel %vm2695_vm2, %v3738_v32, 0.0 }
0x14bb   :  { %v3742_v50 = vpop.eup %3741  ;;  %v2813_v51 = vsel %vm2695_vm2, %v3740_v35, 0.0 }
0x14bc   :  { %2802 = vadd.xlane.f32.xlu0 %v2801_v26  ;;  %v3744_v53 = vpop.eup %3743  ;;  %v2810_v54 = vsel %vm2695_vm2, %v3742_v50, 0.0 }
0x14bd   :  { %v3746_v56 = vpop.eup %3745  ;;  %v2819_v52 = vsel %vm2695_vm2, %v3744_v53, 0.0 }
0x14be   :  { %2799 = vadd.xlane.f32.xlu1 %v2798_v48  ;;  %v3748_v57 = vpop.eup %3747  ;;  %v2816_v60 = vsel %vm2695_vm2, %v3746_v56, 0.0 }
0x14bf   :  { %v3750_v38 = vpop.eup %3749  ;;  %v2825_v59 = vsel %vm2695_vm2, %v3748_v57, 0.0 }
0x14c0   :  { %2808 = vadd.xlane.f32.xlu0 %v2807_v0  ;;  %v2822_v41 = vsel %vm2695_vm2, %v3750_v38, 0.0 }
0x14c2   :  { %2805 = vadd.xlane.f32.xlu1 %v2804_v39 }
0x14c4   :  { %2814 = vadd.xlane.f32.xlu0 %v2813_v51 }
0x14c6   :  { %2811 = vadd.xlane.f32.xlu1 %v2810_v54 }
0x14c8   :  { %2820 = vadd.xlane.f32.xlu0 %v2819_v52 }
0x14ca   :  { %2817 = vadd.xlane.f32.xlu1 %v2816_v60 }
0x14cc   :  { %2826 = vadd.xlane.f32.xlu0 %v2825_v59 }
0x14ce   :  { %2823 = vadd.xlane.f32.xlu1 %v2822_v41 }
0x1539   :  { %v2737_v2 = vpop.xlane.xlu0 %2736 }
0x153a   :  { %v4681_v8 = vsub.f32 %v4637_v25, %v2737_v2 }
0x153b   :  { %v2734_v1 = vpop.xlane.xlu1 %2733 }
0x153c   :  { %v2786_v11 = vmul.f32 1.442695, %v4681_v8  ;;  %v4685_v36 = vsub.f32 %v4645_v12, %v2734_v1 }
0x153d   :  { %v2743_v7 = vpop.xlane.xlu0 %2742 }
0x153e   :  { %3751 = vpow2.f32 %v2786_v11  ;;  %v2784_v16 = vmul.f32 1.442695, %v4685_v36  ;;  %v4689_v18 = vsub.f32 %v4653_v37, %v2743_v7 }
0x153f   :  { %v2740_v23 = vpop.xlane.xlu1 %2739 }
0x1540   :  { %3753 = vpow2.f32 %v2784_v16  ;;  %v2790_v45 = vmul.f32 1.442695, %v4689_v18  ;;  %v4692_v33 = vsub.f32 %v3728_v29, %v2740_v23 }
0x1541   :  { %v2797_v42 = vpop.xlane.xlu0 %2796 }
0x1542   :  { %3755 = vpow2.f32 %v2790_v45  ;;  %v2788_v25 = vmul.f32 1.442695, %v4692_v33 }
0x1543   :  { %3757 = vlog2.f32 %v2797_v42  ;;  %v2794_v14 = vpop.xlane.xlu1 %2793 }
0x1544   :  { %3759 = vpow2.f32 %v2788_v25 }
0x1545   :  { %3761 = vlog2.f32 %v2794_v14  ;;  %v2803_v3 = vpop.xlane.xlu0 %2802 }
0x1546   :  { %3763 = vlog2.f32 %v2803_v3 }
0x1547   :  { %v2800_v12 = vpop.xlane.xlu1 %2799 }
0x1548   :  { %3765 = vlog2.f32 %v2800_v12 }
0x1549   :  { %v2809_v30 = vpop.xlane.xlu0 %2808 }
0x154a   :  { %3767 = vlog2.f32 %v2809_v30 }
0x154b   :  { %v3752_v20 = vpop.eup %3751  ;;  %v2806_v34 = vpop.xlane.xlu1 %2805 }
0x154c   :  { %3769 = vlog2.f32 %v2806_v34  ;;  %v2831_v37 = vsel %vm2695_vm2, %v3752_v20, 0.0 }
0x154d   :  { %v3754_v28 = vpop.eup %3753  ;;  %2832 = vadd.xlane.f32.xlu0 %v2831_v37  ;;  %v2815_v46 = vpop.xlane.xlu0 %2814 }
0x154e   :  { %3771 = vlog2.f32 %v2815_v46  ;;  %v2828_v44 = vsel %vm2695_vm2, %v3754_v28, 0.0 }
0x154f   :  { %v3756_v43 = vpop.eup %3755  ;;  %2829 = vadd.xlane.f32.xlu1 %v2828_v44  ;;  %v2812_v29 = vpop.xlane.xlu1 %2811 }
0x1550   :  { %v3758_v24 = vpop.eup %3757  ;;  %3773 = vlog2.f32 %v2812_v29  ;;  %v2837_v15 = vsel %vm2695_vm2, %v3756_v43, 0.0 }
0x1551   :  { %v3760_v4 = vpop.eup %3759  ;;  %v2843_v63 = vmul.f32 0.6931472, %v3758_v24  ;;  %2838 = vadd.xlane.f32.xlu0 %v2837_v15  ;;  %v2821_v31 = vpop.xlane.xlu0 %2820 }
0x1552   :  { %v3762_v58 = vpop.eup %3761  ;;  %3775 = vlog2.f32 %v2821_v31  ;;  %v2834_v17 = vsel %vm2695_vm2, %v3760_v4, 0.0 }
0x1553   :  { %v3764_v47 = vpop.eup %3763  ;;  %v2873_v6 = vsub.f32 %v4604_v62, %v2843_v63  ;;  %v2841_v26 = vmul.f32 0.6931472, %v3762_v58  ;;  %2835 = vadd.xlane.f32.xlu1 %v2834_v17  ;;  %v2818_v19 = vpop.xlane.xlu1 %2817 }
0x1554   :  { %v2847_v48 = vmul.f32 0.6931472, %v3764_v47  ;;  %3777 = vlog2.f32 %v2818_v19 }
0x1555   :  { %v3766_v32 = vpop.eup %3765  ;;  %2889 = vst.msk [vmem:[%s4790_s11 + $0x8] sm:$0xff] %vm2695_vm2, %v2873_v6  ;;  %v2872_v0 = vsub.f32 %v4608_v55, %v2841_v26  ;;  %v2827_v35 = vpop.xlane.xlu0 %2826 }
0x1556   :  { %v2875_v39 = vsub.f32 %v4613_v61, %v2847_v48  ;;  %v2845_v50 = vmul.f32 0.6931472, %v3766_v32  ;;  %3779 = vlog2.f32 %v2827_v35 }
0x1557   :  { %v3768_v51 = vpop.eup %3767  ;;  %2888 = vst.msk [vmem:[%s4790_s11] sm:$0xff] %vm2695_vm2, %v2872_v0  ;;  %v2824_v62 = vpop.xlane.xlu1 %2823 }
0x1558   :  { %2891 = vst.msk [vmem:[%s4790_s11 + $0x18] sm:$0xff] %vm2695_vm2, %v2875_v39  ;;  %v2874_v53 = vsub.f32 %v4618_v40, %v2845_v50  ;;  %v2851_v55 = vmul.f32 0.6931472, %v3768_v51  ;;  %3781 = vlog2.f32 %v2824_v62 }
0x1559   :  { %v3770_v54 = vpop.eup %3769 }
0x155a   :  { %2890 = vst.msk [vmem:[%s4790_s11 + $0x10] sm:$0xff] %vm2695_vm2, %v2874_v53  ;;  %v2877_v61 = vsub.f32 %v4623_v10, %v2851_v55  ;;  %v2849_v56 = vmul.f32 0.6931472, %v3770_v54 }
0x155b   :  { %v3772_v52 = vpop.eup %3771 }
0x155c   :  { %2893 = vst.msk [vmem:[%s4790_s11 + $0x28] sm:$0xff] %vm2695_vm2, %v2877_v61  ;;  %v2876_v57 = vsub.f32 %v4627_v21, %v2849_v56  ;;  %v2855_v40 = vmul.f32 0.6931472, %v3772_v52 }
0x155d   :  { %v3774_v60 = vpop.eup %3773 }
0x155e   :  { %2892 = vst.msk [vmem:[%s4790_s11 + $0x20] sm:$0xff] %vm2695_vm2, %v2876_v57  ;;  %v2879_v38 = vsub.f32 %v4631_v49, %v2855_v40  ;;  %v2853_v59 = vmul.f32 0.6931472, %v3774_v60 }
0x155f   :  { %v3776_v10 = vpop.eup %3775 }
0x1560   :  { %2895 = vst.msk [vmem:[%s4790_s11 + $0x38] sm:$0xff] %vm2695_vm2, %v2879_v38  ;;  %v2878_v41 = vsub.f32 %v4635_v27, %v2853_v59  ;;  %v2859_v2 = vmul.f32 0.6931472, %v3776_v10 }
0x1561   :  { %v3778_v21 = vpop.eup %3777 }
0x1562   :  { %2894 = vst.msk [vmem:[%s4790_s11 + $0x30] sm:$0xff] %vm2695_vm2, %v2878_v41  ;;  %v2881_v1 = vsub.f32 %v4641_v9, %v2859_v2  ;;  %v2857_v11 = vmul.f32 0.6931472, %v3778_v21 }
0x1563   :  { %v3780_v49 = vpop.eup %3779 }
0x1564   :  { %2897 = vst.msk [vmem:[%s4790_s11 + $0x48] sm:$0xff] %vm2695_vm2, %v2881_v1  ;;  %v2880_v7 = vsub.f32 %v4649_v22, %v2857_v11  ;;  %v2863_v16 = vmul.f32 0.6931472, %v3780_v49 }
0x1565   :  { %v3782_v27 = vpop.eup %3781 }
0x1566   :  { %2896 = vst.msk [vmem:[%s4790_s11 + $0x40] sm:$0xff] %vm2695_vm2, %v2880_v7  ;;  %v2883_v23 = vsub.f32 %v4657_v5, %v2863_v16  ;;  %v2861_v45 = vmul.f32 0.6931472, %v3782_v27 }
0x1568   :  { %2899 = vst.msk [vmem:[%s4790_s11 + $0x58] sm:$0xff] %vm2695_vm2, %v2883_v23  ;;  %v2882_v9 = vsub.f32 %v4663_v13, %v2861_v45 }
0x156a   :  { %2898 = vst.msk [vmem:[%s4790_s11 + $0x50] sm:$0xff] %vm2695_vm2, %v2882_v9 }
0x15d6   :  { %v2833_v22 = vpop.xlane.xlu0 %2832 }
0x15d7   :  { %3783 = vlog2.f32 %v2833_v22 }
0x15d8   :  { %v2830_v42 = vpop.xlane.xlu1 %2829 }
0x15d9   :  { %3785 = vlog2.f32 %v2830_v42 }
0x15da   :  { %v2839_v25 = vpop.xlane.xlu0 %2838 }
0x15db   :  { %3787 = vlog2.f32 %v2839_v25 }
0x15dc   :  { %v2836_v5 = vpop.xlane.xlu1 %2835 }
0x15dd   :  { %3789 = vlog2.f32 %v2836_v5 }
0x15e4   :  { %v3784_v14 = vpop.eup %3783 }
0x15e5   :  { %v2867_v3 = vmul.f32 0.6931472, %v3784_v14 }
0x15e6   :  { %v3786_v12 = vpop.eup %3785 }
0x15e7   :  { %v2885_v30 = vsub.f32 %v4681_v8, %v2867_v3  ;;  %v2865_v20 = vmul.f32 0.6931472, %v3786_v12 }
0x15e8   :  { %v3788_v13 = vpop.eup %3787 }
0x15e9   :  { %2901 = vst.msk [vmem:[%s4790_s11 + $0x68] sm:$0xff] %vm2695_vm2, %v2885_v30  ;;  %v2884_v34 = vsub.f32 %v4685_v36, %v2865_v20  ;;  %v2871_v37 = vmul.f32 0.6931472, %v3788_v13 }
0x15ea   :  { %v3790_v28 = vpop.eup %3789 }
0x15eb   :  { %2900 = vst.msk [vmem:[%s4790_s11 + $0x60] sm:$0xff] %vm2695_vm2, %v2884_v34  ;;  %v2887_v46 = vsub.f32 %v4689_v18, %v2871_v37  ;;  %v2869_v44 = vmul.f32 0.6931472, %v3790_v28 }
0x15ed   :  { %2903 = vst.msk [vmem:[%s4790_s11 + $0x78] sm:$0xff] %vm2695_vm2, %v2887_v46  ;;  %v2886_v8 = vsub.f32 %v4692_v33, %v2869_v44 }
0x15ef   :  { %2902 = vst.msk [vmem:[%s4790_s11 + $0x70] sm:$0xff] %vm2695_vm2, %v2886_v8 }

</bundles_post_ra>
